<compile_context>
chip_gen: v7x
topology: tpu7x:2x2x1
jax: 0.10.0
libtpu: 0.0.40
codegen_flags: <defaults>
</compile_context>

<pallas_src>
import functools
import math

import jax
import jax.numpy as jnp
from jax import lax
from jax.experimental import pallas as pl
from jax.experimental.pallas import tpu as pltpu

LN_EPS = 1e-5                 # roberta-base layer_norm_eps
PAD_TOKEN_ID = 1              # roberta padding idx (also position offset)
NEG_BIG = -1e9                # additive mask sentinel
INV_SQRT2 = 1.0 / math.sqrt(2.0)

COMPUTE_DTYPE = jnp.bfloat16  # MXU operand dtype (accumulation stays f32)
ACT_DTYPE = jnp.bfloat16      # hidden-state storage dtype between kernels


# ------------------------------ tiling helpers ------------------------------ #

def _tile(dim, target, align):
    """Largest multiple of `align` <= target that divides `dim`, else full dim."""
    if dim <= target:
        return dim
    t = (target // align) * align
    while t >= align:
        if dim % t == 0:
            return t
        t -= align
    return dim


def _physical_vmem_bytes():
    # Generation-aware VMEM capacity (v5e/v6e 128 MiB, v7x 64 MiB per TC).
    try:
        info = pltpu.get_tpu_info()
        for attr in ("vmem_capacity_bytes", "vmem_bytes", "vmem_size_bytes"):
            v = getattr(info, attr, None)
            if v:
                return int(v)
    except Exception:
        pass
    return 64 << 20   # conservative fallback (v7x per-TC size)


_VMEM_CAP = None


def _vmem_cap():
    global _VMEM_CAP
    if _VMEM_CAP is None:
        _VMEM_CAP = (_physical_vmem_bytes() * 3) // 4   # <=75% of physical
    return _VMEM_CAP


def _cparams(dim_sem, est_block_bytes):
    # Explicit scoped-VMEM budget: double-buffered block bytes + margin,
    # never below the 32 MiB default, never above 75% of physical VMEM.
    vmem = int(2 * est_block_bytes) + (4 << 20)
    vmem = max(32 << 20, vmem)
    vmem = min(vmem, _vmem_cap())
    return pltpu.CompilerParams(dimension_semantics=dim_sem,
                                vmem_limit_bytes=vmem)


def _ln_f32(y, g, beta):
    # two-pass (subtract-mean) moments: avoids E[x^2]-E[x]^2 cancellation and
    # matches PyTorch LayerNorm more closely; epilogue-only, not on hot path.
    mu = jnp.mean(y, axis=-1, keepdims=True)
    yc = y - mu
    var = jnp.mean(yc * yc, axis=-1, keepdims=True)
    return yc * lax.rsqrt(var + LN_EPS) * g + beta


# ----------------------------- Pallas kernels ------------------------------ #

def _matmul_bias_kernel(x_ref, w_ref, b_ref, o_ref, acc_ref, *, activation):
    @pl.when(pl.program_id(2) == 0)
    def _():
        acc_ref[...] = jnp.zeros_like(acc_ref)

    acc_ref[...] += jnp.dot(x_ref[...].astype(COMPUTE_DTYPE),
                            w_ref[...].astype(COMPUTE_DTYPE),
                            preferred_element_type=jnp.float32)

    @pl.when(pl.program_id(2) == pl.num_programs(2) - 1)
    def _():
        y = acc_ref[...] + b_ref[...].astype(jnp.float32)
        if activation == "gelu":
            # exact erf-GELU, matching HF RoBERTa / torch.nn.GELU default
            y = 0.5 * y * (1.0 + lax.erf(y * INV_SQRT2))
        o_ref[...] = y.astype(o_ref.dtype)


def _matmul_add_ln_kernel(x_ref, w_ref, b_ref, res_ref, g_ref, beta_ref,
                          o_ref, acc_ref):
    @pl.when(pl.program_id(1) == 0)
    def _():
        acc_ref[...] = jnp.zeros_like(acc_ref)

    acc_ref[...] += jnp.dot(x_ref[...].astype(COMPUTE_DTYPE),
                            w_ref[...].astype(COMPUTE_DTYPE),
                            preferred_element_type=jnp.float32)

    @pl.when(pl.program_id(1) == pl.num_programs(1) - 1)
    def _():
        y = (acc_ref[...] + b_ref[...].astype(jnp.float32)
             + res_ref[...].astype(jnp.float32))
        o_ref[...] = _ln_f32(y,
                             g_ref[...].astype(jnp.float32),
                             beta_ref[...].astype(jnp.float32)).astype(o_ref.dtype)


def _matmul_add_ln_regress_kernel(x_ref, w_ref, b_ref, res_ref, g_ref, beta_ref,
                                  wr_ref, br_ref, logit_ref, acc_ref):
    @pl.when(pl.program_id(1) == 0)
    def _():
        acc_ref[...] = jnp.zeros_like(acc_ref)

    acc_ref[...] += jnp.dot(x_ref[...].astype(COMPUTE_DTYPE),
                            w_ref[...].astype(COMPUTE_DTYPE),
                            preferred_element_type=jnp.float32)

    @pl.when(pl.program_id(1) == pl.num_programs(1) - 1)
    def _():
        y = (acc_ref[...] + b_ref[...].astype(jnp.float32)
             + res_ref[...].astype(jnp.float32))
        h = _ln_f32(y,
                    g_ref[...].astype(jnp.float32),
                    beta_ref[...].astype(jnp.float32))
        # regressor Linear(H, 1) as VPU multiply + lane reduction: avoids an
        # N=1 MXU matmul, an extra pallas_call and a hidden-slab round trip.
        r = jnp.sum(h * wr_ref[...].astype(jnp.float32), axis=-1, keepdims=True)
        logit_ref[...] = (r + br_ref[...].astype(jnp.float32)).astype(logit_ref.dtype)


def _layernorm_kernel(x_ref, g_ref, b_ref, o_ref):
    y = x_ref[...].astype(jnp.float32)
    o_ref[...] = _ln_f32(y,
                         g_ref[...].astype(jnp.float32),
                         b_ref[...].astype(jnp.float32)).astype(o_ref.dtype)


def _sdpa_one_head(q, k, v, mask, scale):
    # q, k, v: (S, dh) bf16; mask: (1, S) f32 additive
    q = q * jnp.asarray(scale, q.dtype)                              # fold scale into q
    s = lax.dot_general(q, k, (((1,), (1,)), ((), ())),
                        preferred_element_type=jnp.float32) + mask   # (S, S) f32
    m = jnp.max(s, axis=-1, keepdims=True)
    p = jnp.exp(s - m)
    denom = jnp.sum(p, axis=-1, keepdims=True)
    ctx = jnp.dot(p.astype(COMPUTE_DTYPE), v,
                  preferred_element_type=jnp.float32)                # (S, dh) f32
    return ctx * pl.reciprocal(denom, approx=True)                   # scale (S,dh) not (S,S)


def _attention_group_kernel(q_ref, k_ref, v_ref, mask_ref, o_ref, *, scale, heads, dh):
    # q_ref/k_ref/v_ref: (S, heads*dh) column blocks of the flat QKV slab
    mask = mask_ref[...].astype(jnp.float32)            # (1, S)
    outs = []
    for h in range(heads):                              # short, unrolled
        lo = h * dh
        outs.append(_sdpa_one_head(q_ref[:, lo:lo + dh],
                                   k_ref[:, lo:lo + dh],
                                   v_ref[:, lo:lo + dh], mask, scale))
    ctx = outs[0] if heads == 1 else jnp.concatenate(outs, axis=-1)
    o_ref[...] = ctx.astype(o_ref.dtype)                # one lane-dense store


def _attention_full_kernel(qkv_ref, mask_ref, o_ref, *, scale, n_heads, dh, hidden):
    # qkv_ref: (S, 3H) — whole slab for one batch row (small-shape fallback)
    mask = mask_ref[...].astype(jnp.float32)
    outs = []
    for h in range(n_heads):
        lo = h * dh
        outs.append(_sdpa_one_head(qkv_ref[:, lo:lo + dh],
                                   qkv_ref[:, hidden + lo:hidden + lo + dh],
                                   qkv_ref[:, 2 * hidden + lo:2 * hidden + lo + dh],
                                   mask, scale))
    ctx = outs[0] if n_heads == 1 else jnp.concatenate(outs, axis=-1)
    o_ref[...] = ctx.astype(o_ref.dtype)


# ------------------------------ kernel wrappers ----------------------------- #

def _linear(x, w, b, *, activation=None, out_dtype=ACT_DTYPE,
            tm_target=1024, tn_target=768, tk_target=512):
    M, K = x.shape
    Kw, N = w.shape
    assert K == Kw and b.shape == (1, N)
    tm = _tile(M, tm_target, 8)
    tn = _tile(N, tn_target, 128)
    tk = _tile(K, tk_target, 128)
    grid = (M // tm, N // tn, K // tk)
    est = (tm * tk * x.dtype.itemsize + tk * tn * w.dtype.itemsize + tn * 4
           + tm * tn * jnp.dtype(out_dtype).itemsize + 2 * tm * tn * 4)
    return pl.pallas_call(
        functools.partial(_matmul_bias_kernel, activation=activation),
        out_shape=jax.ShapeDtypeStruct((M, N), out_dtype),
        grid_spec=pltpu.PrefetchScalarGridSpec(
            num_scalar_prefetch=0,
            grid=grid,
            in_specs=[
                pl.BlockSpec((tm, tk), lambda i, j, k: (i, k)),
                pl.BlockSpec((tk, tn), lambda i, j, k: (k, j)),
                pl.BlockSpec((1, tn), lambda i, j, k: (0, j)),
            ],
            out_specs=pl.BlockSpec((tm, tn), lambda i, j, k: (i, j)),
            scratch_shapes=[pltpu.VMEM((tm, tn), jnp.float32)],
        ),
        compiler_params=_cparams(("parallel", "parallel", "arbitrary"), est),
    )(x, w, b)


def _linear_add_ln(x, w, b, res, g, beta, *, out_dtype=ACT_DTYPE,
                   tm_target=1024, tk_target=512):
    M, K = x.shape
    Kw, N = w.shape
    assert K == Kw and res.shape == (M, N)
    tm = _tile(M, tm_target, 8)
    tk = _tile(K, tk_target, 128)
    grid = (M // tm, K // tk)
    est = (tm * tk * x.dtype.itemsize + tk * N * w.dtype.itemsize + 3 * N * 4
           + tm * N * res.dtype.itemsize
           + tm * N * jnp.dtype(out_dtype).itemsize + 2 * tm * N * 4)
    return pl.pallas_call(
        _matmul_add_ln_kernel,
        out_shape=jax.ShapeDtypeStruct((M, N), out_dtype),
        grid_spec=pltpu.PrefetchScalarGridSpec(
            num_scalar_prefetch=0,
            grid=grid,
            in_specs=[
                pl.BlockSpec((tm, tk), lambda i, k: (i, k)),
                pl.BlockSpec((tk, N), lambda i, k: (k, 0)),
                pl.BlockSpec((1, N), lambda i, k: (0, 0)),
                pl.BlockSpec((tm, N), lambda i, k: (i, 0)),
                pl.BlockSpec((1, N), lambda i, k: (0, 0)),
                pl.BlockSpec((1, N), lambda i, k: (0, 0)),
            ],
            out_specs=pl.BlockSpec((tm, N), lambda i, k: (i, 0)),
            scratch_shapes=[pltpu.VMEM((tm, N), jnp.float32)],
        ),
        compiler_params=_cparams(("parallel", "arbitrary"), est),
    )(x, w, b, res, g, beta)


def _linear_add_ln_regress(x, w, b, res, g, beta, wr, br, *,
                           tm_target=1024, tk_target=512):
    M, K = x.shape
    Kw, N = w.shape
    assert K == Kw and res.shape == (M, N) and wr.shape == (1, N)
    tm = _tile(M, tm_target, 8)
    tk = _tile(K, tk_target, 128)
    grid = (M // tm, K // tk)
    est = (tm * tk * x.dtype.itemsize + tk * N * w.dtype.itemsize + 4 * N * 4
           + tm * N * res.dtype.itemsize + tm * 4 + 3 * tm * N * 4)
    return pl.pallas_call(
        _matmul_add_ln_regress_kernel,
        out_shape=jax.ShapeDtypeStruct((M, 1), jnp.float32),
        grid_spec=pltpu.PrefetchScalarGridSpec(
            num_scalar_prefetch=0,
            grid=grid,
            in_specs=[
                pl.BlockSpec((tm, tk), lambda i, k: (i, k)),
                pl.BlockSpec((tk, N), lambda i, k: (k, 0)),
                pl.BlockSpec((1, N), lambda i, k: (0, 0)),
                pl.BlockSpec((tm, N), lambda i, k: (i, 0)),
                pl.BlockSpec((1, N), lambda i, k: (0, 0)),
                pl.BlockSpec((1, N), lambda i, k: (0, 0)),
                pl.BlockSpec((1, N), lambda i, k: (0, 0)),
                pl.BlockSpec((1, 1), lambda i, k: (0, 0)),
            ],
            out_specs=pl.BlockSpec((tm, 1), lambda i, k: (i, 0)),
            scratch_shapes=[pltpu.VMEM((tm, N), jnp.float32)],
        ),
        compiler_params=_cparams(("parallel", "arbitrary"), est),
    )(x, w, b, res, g, beta, wr, br)


def _layer_norm(x, g, b, *, out_dtype=ACT_DTYPE, tm_target=1024):
    M, N = x.shape
    tm = _tile(M, tm_target, 8)
    est = (tm * N * x.dtype.itemsize + 2 * N * 4
           + tm * N * jnp.dtype(out_dtype).itemsize + tm * N * 4)
    return pl.pallas_call(
        _layernorm_kernel,
        out_shape=jax.ShapeDtypeStruct((M, N), out_dtype),
        grid_spec=pltpu.PrefetchScalarGridSpec(
            num_scalar_prefetch=0,
            grid=(M // tm,),
            in_specs=[pl.BlockSpec((tm, N), lambda i: (i, 0)),
                      pl.BlockSpec((1, N), lambda i: (0, 0)),
                      pl.BlockSpec((1, N), lambda i: (0, 0))],
            out_specs=pl.BlockSpec((tm, N), lambda i: (i, 0)),
        ),
        compiler_params=_cparams(("parallel",), est),
    )(x, g, b)


def _attention(qkv, add_mask, *, n_heads, dh, scale, out_dtype=ACT_DTYPE):
    """qkv: (B, S, 3H) flat fused-projection slab; add_mask: (B, 1, S) additive.

    Heads are read directly out of the slab's columns through the in_specs
    (no XLA transpose); the output is written directly in (B, S, H) layout.
    """
    B, S, H3 = qkv.shape
    H = H3 // 3
    assert n_heads * dh == H

    # smallest head group whose column block is 128-lane aligned (e.g. dh=64 -> 2)
    hpg = None
    for cand in range(1, n_heads + 1):
        if n_heads % cand == 0 and (cand * dh) % 128 == 0:
            hpg = cand
            break

    if hpg is not None:
        nq = n_heads // hpg                    # head-group blocks per q/k/v segment
        wcols = hpg * dh
        est = (3 * S * wcols * qkv.dtype.itemsize + S * 4
               + S * wcols * jnp.dtype(out_dtype).itemsize + 3 * S * S * 4)

        def qkv_spec(col_base):
            return pl.BlockSpec((None, S, wcols),
                                lambda b, g, cb=col_base: (b, 0, cb + g))

        # NOTE(v7x): grid = (B, n_heads//hpg) keeps both TensorCores busy as
        # long as B * n_heads / hpg is at least a few dozen steps.
        return pl.pallas_call(
            functools.partial(_attention_group_kernel,
                              scale=scale, heads=hpg, dh=dh),
            out_shape=jax.ShapeDtypeStruct((B, S, H), out_dtype),
            grid_spec=pltpu.PrefetchScalarGridSpec(
                num_scalar_prefetch=0,
                grid=(B, nq),
                in_specs=[qkv_spec(0), qkv_spec(nq), qkv_spec(2 * nq),
                          pl.BlockSpec((None, 1, S), lambda b, g: (b, 0, 0))],
                out_specs=pl.BlockSpec((None, S, wcols), lambda b, g: (b, 0, g)),
            ),
            compiler_params=_cparams(("parallel", "parallel"), est),
        )(qkv, qkv, qkv, add_mask)

    # fallback (head blocks not 128-alignable, e.g. tiny demo shapes): process
    # the whole slab for one batch row per grid step — all blocks full-dim.
    est = (S * H3 * qkv.dtype.itemsize + S * 4
           + S * H * jnp.dtype(out_dtype).itemsize + 3 * S * S * 4)
    return pl.pallas_call(
        functools.partial(_attention_full_kernel, scale=scale,
                          n_heads=n_heads, dh=dh, hidden=H),
        out_shape=jax.ShapeDtypeStruct((B, S, H), out_dtype),
        grid_spec=pltpu.PrefetchScalarGridSpec(
            num_scalar_prefetch=0,
            grid=(B,),
            in_specs=[pl.BlockSpec((None, S, H3), lambda b: (b, 0, 0)),
                      pl.BlockSpec((None, 1, S), lambda b: (b, 0, 0))],
            out_specs=pl.BlockSpec((None, S, H), lambda b: (b, 0, 0)),
        ),
        compiler_params=_cparams(("parallel",), est),
    )(qkv, add_mask)


# ------------------------------- parameters -------------------------------- #

def init_params(key, *, vocab_size, hidden, n_layers, n_heads, intermediate, max_pos):
    del n_heads  # shape-independent here
    keys = jax.random.split(key, 4 + n_layers)

    def dense(k, shape):
        return 0.02 * jax.random.normal(k, shape, dtype=jnp.float32)

    params = {
        "word_emb": dense(keys[0], (vocab_size, hidden)),
        "pos_emb": dense(keys[1], (max_pos, hidden)),
        "type_emb": dense(keys[2], (1, hidden)),          # roberta type_vocab_size=1
        "emb_ln_g": jnp.ones((1, hidden), jnp.float32),
        "emb_ln_b": jnp.zeros((1, hidden), jnp.float32),
        "wr": dense(keys[3], (1, hidden)),                # regressor weight row (H,)
        "br": jnp.zeros((1, 1), jnp.float32),
        "layers": [],
    }
    for li in range(n_layers):
        ks = jax.random.split(keys[4 + li], 6)
        wq = dense(ks[0], (hidden, hidden))
        wk = dense(ks[1], (hidden, hidden))
        wv = dense(ks[2], (hidden, hidden))
        params["layers"].append({
            # fused QKV projection: x is read once, single (H, 3H) MXU matmul
            "wqkv": jnp.concatenate([wq, wk, wv], axis=1).astype(COMPUTE_DTYPE),
            "bqkv": jnp.zeros((1, 3 * hidden), jnp.float32),
            "wo": dense(ks[3], (hidden, hidden)).astype(COMPUTE_DTYPE),
            "bo": jnp.zeros((1, hidden), jnp.float32),
            "ln1_g": jnp.ones((1, hidden), jnp.float32),
            "ln1_b": jnp.zeros((1, hidden), jnp.float32),
            "w1": dense(ks[4], (hidden, intermediate)).astype(COMPUTE_DTYPE),
            "b1": jnp.zeros((1, intermediate), jnp.float32),
            "w2": dense(ks[5], (intermediate, hidden)).astype(COMPUTE_DTYPE),
            "b2": jnp.zeros((1, hidden), jnp.float32),
            "ln2_g": jnp.ones((1, hidden), jnp.float32),
            "ln2_b": jnp.zeros((1, hidden), jnp.float32),
        })
    return params


# --------------------------------- forward ---------------------------------- #

def roberta_regression_forward(params, input_ids, attention_mask, *, n_heads):
    B, S = input_ids.shape
    H = params["word_emb"].shape[1]
    dh = H // n_heads
    scale = 1.0 / math.sqrt(dh)
    n_layers = len(params["layers"])
    assert n_layers >= 1

    # -- roberta embeddings (plain-JAX glue: gathers / position ids) ----------
    ne_pad = (input_ids != PAD_TOKEN_ID).astype(jnp.int32)
    position_ids = jnp.cumsum(ne_pad, axis=1) * ne_pad + PAD_TOKEN_ID
    emb = (params["word_emb"][input_ids]
           + params["pos_emb"][position_ids]
           + params["type_emb"][0][None, None, :]).astype(ACT_DTYPE)   # bf16 slab
    x = _layer_norm(emb.reshape(B * S, H),
                    params["emb_ln_g"], params["emb_ln_b"])            # (B*S, H) bf16

    # -- additive attention mask, kept un-repeated over heads -----------------
    add_mask = ((1.0 - attention_mask.astype(jnp.float32)) * NEG_BIG).reshape(B, 1, S)

    logits = None
    for li, lyr in enumerate(params["layers"]):
        residual = x
        qkv = _linear(x, lyr["wqkv"], lyr["bqkv"])                 # (B*S, 3H) bf16
        # no transposes: attention indexes heads straight out of the flat slab
        # and writes (B, S, H); both reshapes below are free (row-major).
        ctx = _attention(qkv.reshape(B, S, 3 * H), add_mask,
                         n_heads=n_heads, dh=dh, scale=scale)      # (B, S, H) bf16
        # fused: output projection + residual add + LayerNorm
        x = _linear_add_ln(ctx.reshape(B * S, H), lyr["wo"], lyr["bo"], residual,
                           lyr["ln1_g"], lyr["ln1_b"])

        residual = x
        h = _linear(x, lyr["w1"], lyr["b1"], activation="gelu")    # (B*S, I) bf16
        if li == n_layers - 1:
            # final layer: fuse w2 matmul + residual + LN + H->1 regressor head
            logits = _linear_add_ln_regress(h, lyr["w2"], lyr["b2"], residual,
                                            lyr["ln2_g"], lyr["ln2_b"],
                                            params["wr"], params["br"])
        else:
            x = _linear_add_ln(h, lyr["w2"], lyr["b2"], residual,
                               lyr["ln2_g"], lyr["ln2_b"])

    return logits.reshape(B, S, 1)


# ----------------------------------- main ----------------------------------- #

if __name__ == "__main__":
    key = jax.random.PRNGKey(0)
    B, S, H = 2, 8, 32
    N_HEADS, N_LAYERS, INTERMEDIATE = 2, 2, 64
    VOCAB, MAX_POS = 50, S + 4

    pkey, ikey = jax.random.split(key)
    params = init_params(pkey, vocab_size=VOCAB, hidden=H, n_layers=N_LAYERS,
                         n_heads=N_HEADS, intermediate=INTERMEDIATE, max_pos=MAX_POS)

    input_ids = jax.random.randint(ikey, (B, S), 3, VOCAB, dtype=jnp.int32)
    input_ids = input_ids.at[1, -2:].set(PAD_TOKEN_ID)          # pad tail of sample 1
    attention_mask = jnp.ones((B, S), jnp.int32).at[1, -2:].set(0)

    fwd = jax.jit(functools.partial(roberta_regression_forward, n_heads=N_HEADS))
    logits = fwd(params, input_ids, attention_mask)
    logits = jax.block_until_ready(logits)
    assert logits.shape == (B, S, 1) and logits.dtype == jnp.float32
    assert bool(jnp.all(jnp.isfinite(logits)))
    print("KERNEL_OK")
</pallas_src>

<mosaic_0001>
module attributes {stable_mosaic.version = 11 : i64} {
  func.func @_layernorm_kernel(%arg0: i32, %arg1: memref<16x32xbf16, #tpu.memory_space<vmem>>, %arg2: memref<1x32xf32, #tpu.memory_space<vmem>>, %arg3: memref<1x32xf32, #tpu.memory_space<vmem>>, %arg4: memref<16x32xbf16, #tpu.memory_space<vmem>>) attributes {dimension_semantics = [#tpu.dimension_semantics<parallel>], iteration_bounds = array<i64: 1>, scalar_prefetch = 0 : i64, scratch_operands = 0 : i64, tpu.core_type = #tpu.core_type<tc>, window_params = [{transform_indices = @transform_0, window_bounds = array<i64: 16, 32>}, {pipeline_mode = #tpu.pipeline_mode<synchronous>, transform_indices = @transform_1, window_bounds = array<i64: 1, 32>}, {pipeline_mode = #tpu.pipeline_mode<synchronous>, transform_indices = @transform_2, window_bounds = array<i64: 1, 32>}, {transform_indices = @transform_3, window_bounds = array<i64: 16, 32>}]} {
    %c0 = arith.constant 0 : index
    %c0_0 = arith.constant 0 : index
    %0 = vector.load %arg1[%c0, %c0_0] : memref<16x32xbf16, #tpu.memory_space<vmem>>, vector<16x32xbf16>
    %1 = arith.extf %0 : vector<16x32xbf16> to vector<16x32xf32>
    %c0_1 = arith.constant 0 : index
    %c0_2 = arith.constant 0 : index
    %2 = vector.load %arg2[%c0_1, %c0_2] : memref<1x32xf32, #tpu.memory_space<vmem>>, vector<1x32xf32>
    %c0_3 = arith.constant 0 : index
    %c0_4 = arith.constant 0 : index
    %3 = vector.load %arg3[%c0_3, %c0_4] : memref<1x32xf32, #tpu.memory_space<vmem>>, vector<1x32xf32>
    %cst = arith.constant dense<0.000000e+00> : vector<16xf32>
    %4 = vector.multi_reduction <add>, %1, %cst [1] : vector<16x32xf32> to vector<16xf32>
    %5 = vector.shape_cast %4 : vector<16xf32> to vector<16x1xf32>
    %cst_5 = arith.constant 3.200000e+01 : f32
    %6 = vector.broadcast %cst_5 : f32 to vector<16x1xf32>
    %7 = arith.divf %5, %6 : vector<16x1xf32>
    %8 = vector.broadcast %7 : vector<16x1xf32> to vector<16x32xf32>
    %9 = arith.subf %1, %8 : vector<16x32xf32>
    %10 = arith.mulf %9, %9 : vector<16x32xf32>
    %cst_6 = arith.constant dense<0.000000e+00> : vector<16xf32>
    %11 = vector.multi_reduction <add>, %10, %cst_6 [1] : vector<16x32xf32> to vector<16xf32>
    %12 = vector.shape_cast %11 : vector<16xf32> to vector<16x1xf32>
    %cst_7 = arith.constant 3.200000e+01 : f32
    %13 = vector.broadcast %cst_7 : f32 to vector<16x1xf32>
    %14 = arith.divf %12, %13 : vector<16x1xf32>
    %cst_8 = arith.constant 9.99999974E-6 : f32
    %15 = vector.broadcast %cst_8 : f32 to vector<16x1xf32>
    %16 = arith.addf %14, %15 : vector<16x1xf32>
    %17 = math.rsqrt %16 : vector<16x1xf32>
    %18 = vector.broadcast %17 : vector<16x1xf32> to vector<16x32xf32>
    %19 = arith.mulf %9, %18 : vector<16x32xf32>
    %20 = vector.broadcast %2 : vector<1x32xf32> to vector<16x32xf32>
    %21 = arith.mulf %19, %20 : vector<16x32xf32>
    %22 = vector.broadcast %3 : vector<1x32xf32> to vector<16x32xf32>
    %23 = arith.addf %21, %22 : vector<16x32xf32>
    %24 = arith.truncf %23 : vector<16x32xf32> to vector<16x32xbf16>
    %c0_9 = arith.constant 0 : index
    %c0_10 = arith.constant 0 : index
    %25 = vector.load %arg4[%c0_9, %c0_10] : memref<16x32xbf16, #tpu.memory_space<vmem>>, vector<16x32xbf16>
    tpu.vector_store %arg4[%c0_9, %c0_10], %24 {strides = array<i32>} : memref<16x32xbf16, #tpu.memory_space<vmem>>, vector<16x32xbf16>,
    return
  }
  func.func @transform_0(%arg0: i32) -> (i32, i32) {
    %c0_i32 = arith.constant 0 : i32
    %c0_i32_0 = arith.constant 0 : i32
    return %arg0, %c0_i32 : i32, i32
  }
  func.func @transform_1(%arg0: i32) -> (i32, i32) {
    %c0_i32 = arith.constant 0 : i32
    %c0_i32_0 = arith.constant 0 : i32
    %c0_i32_1 = arith.constant 0 : i32
    return %c0_i32, %c0_i32_0 : i32, i32
  }
  func.func @transform_2(%arg0: i32) -> (i32, i32) {
    %c0_i32 = arith.constant 0 : i32
    %c0_i32_0 = arith.constant 0 : i32
    %c0_i32_1 = arith.constant 0 : i32
    return %c0_i32, %c0_i32_0 : i32, i32
  }
  func.func @transform_3(%arg0: i32) -> (i32, i32) {
    %c0_i32 = arith.constant 0 : i32
    %c0_i32_0 = arith.constant 0 : i32
    return %arg0, %c0_i32 : i32, i32
  }
}

module attributes {stable_mosaic.version = 11 : i64} {
  func.func @_matmul_bias_kernel(%arg0: i32, %arg1: i32, %arg2: i32, %arg3: memref<16x32xbf16, #tpu.memory_space<vmem>>, %arg4: memref<32x96xbf16, #tpu.memory_space<vmem>>, %arg5: memref<1x96xf32, #tpu.memory_space<vmem>>, %arg6: memref<16x96xbf16, #tpu.memory_space<vmem>>, %arg7: memref<16x96xf32, #tpu.memory_space<vmem>>) attributes {dimension_semantics = [#tpu.dimension_semantics<parallel>, #tpu.dimension_semantics<parallel>, #tpu.dimension_semantics<arbitrary>], iteration_bounds = array<i64: 1, 1, 1>, scalar_prefetch = 0 : i64, scratch_operands = 1 : i64, tpu.core_type = #tpu.core_type<tc>, window_params = [{transform_indices = @transform_0, window_bounds = array<i64: 16, 32>}, {transform_indices = @transform_1, window_bounds = array<i64: 32, 96>}, {transform_indices = @transform_2, window_bounds = array<i64: 1, 96>}, {transform_indices = @transform_3, window_bounds = array<i64: 16, 96>}]} {
    %c0_i32 = arith.constant 0 : i32
    %0 = arith.cmpi eq, %arg2, %c0_i32 : i32
    %1 = arith.extui %0 : i1 to i32
    %c0_i32_0 = arith.constant 0 : i32
    %2 = arith.cmpi ne, %1, %c0_i32_0 : i32
    scf.if %2 {
      %cst_10 = arith.constant 0.000000e+00 : f32
      %12 = vector.broadcast %cst_10 : f32 to vector<16x96xf32>
      %c0_11 = arith.constant 0 : index
      %c0_12 = arith.constant 0 : index
      %13 = vector.load %arg7[%c0_11, %c0_12] : memref<16x96xf32, #tpu.memory_space<vmem>>, vector<16x96xf32>
      tpu.vector_store %arg7[%c0_11, %c0_12], %12 {strides = array<i32>} : memref<16x96xf32, #tpu.memory_space<vmem>>, vector<16x96xf32>,
    } else {
    }
    %c0 = arith.constant 0 : index
    %c0_1 = arith.constant 0 : index
    %3 = vector.load %arg7[%c0, %c0_1] : memref<16x96xf32, #tpu.memory_space<vmem>>, vector<16x96xf32>
    %c0_2 = arith.constant 0 : index
    %c0_3 = arith.constant 0 : index
    %4 = vector.load %arg3[%c0_2, %c0_3] : memref<16x32xbf16, #tpu.memory_space<vmem>>, vector<16x32xbf16>
    %c0_4 = arith.constant 0 : index
    %c0_5 = arith.constant 0 : index
    %5 = vector.load %arg4[%c0_4, %c0_5] : memref<32x96xbf16, #tpu.memory_space<vmem>>, vector<32x96xbf16>
    %cst = arith.constant dense<0.000000e+00> : vector<16x96xf32>
    %6 = tpu.matmul %4, %5, %cst {dimension_numbers = #tpu.dot_dimension_numbers<[1], [0], [0], [1], [0, 0, 1, 1], [], []>} : vector<16x32xbf16>, vector<32x96xbf16>, vector<16x96xf32> -> vector<16x96xf32>
    %7 = arith.addf %3, %6 : vector<16x96xf32>
    %c0_6 = arith.constant 0 : index
    %c0_7 = arith.constant 0 : index
    %8 = vector.load %arg7[%c0_6, %c0_7] : memref<16x96xf32, #tpu.memory_space<vmem>>, vector<16x96xf32>
    tpu.vector_store %arg7[%c0_6, %c0_7], %7 {strides = array<i32>} : memref<16x96xf32, #tpu.memory_space<vmem>>, vector<16x96xf32>,
    %c0_i32_8 = arith.constant 0 : i32
    %9 = arith.cmpi eq, %arg2, %c0_i32_8 : i32
    %10 = arith.extui %9 : i1 to i32
    %c0_i32_9 = arith.constant 0 : i32
    %11 = arith.cmpi ne, %10, %c0_i32_9 : i32
    scf.if %11 {
      %c0_10 = arith.constant 0 : index
      %c0_11 = arith.constant 0 : index
      %12 = vector.load %arg7[%c0_10, %c0_11] : memref<16x96xf32, #tpu.memory_space<vmem>>, vector<16x96xf32>
      %c0_12 = arith.constant 0 : index
      %c0_13 = arith.constant 0 : index
      %13 = vector.load %arg5[%c0_12, %c0_13] : memref<1x96xf32, #tpu.memory_space<vmem>>, vector<1x96xf32>
      %14 = vector.broadcast %13 : vector<1x96xf32> to vector<16x96xf32>
      %15 = arith.addf %12, %14 : vector<16x96xf32>
      %16 = arith.truncf %15 : vector<16x96xf32> to vector<16x96xbf16>
      %c0_14 = arith.constant 0 : index
      %c0_15 = arith.constant 0 : index
      %17 = vector.load %arg6[%c0_14, %c0_15] : memref<16x96xbf16, #tpu.memory_space<vmem>>, vector<16x96xbf16>
      tpu.vector_store %arg6[%c0_14, %c0_15], %16 {strides = array<i32>} : memref<16x96xbf16, #tpu.memory_space<vmem>>, vector<16x96xbf16>,
    } else {
    }
    return
  }
  func.func @transform_0(%arg0: i32, %arg1: i32, %arg2: i32) -> (i32, i32) {
    %c0_i32 = arith.constant 0 : i32
    return %arg0, %arg2 : i32, i32
  }
  func.func @transform_1(%arg0: i32, %arg1: i32, %arg2: i32) -> (i32, i32) {
    %c0_i32 = arith.constant 0 : i32
    return %arg2, %arg1 : i32, i32
  }
  func.func @transform_2(%arg0: i32, %arg1: i32, %arg2: i32) -> (i32, i32) {
    %c0_i32 = arith.constant 0 : i32
    %c0_i32_0 = arith.constant 0 : i32
    return %c0_i32, %arg1 : i32, i32
  }
  func.func @transform_3(%arg0: i32, %arg1: i32, %arg2: i32) -> (i32, i32) {
    %c0_i32 = arith.constant 0 : i32
    return %arg0, %arg1 : i32, i32
  }
}

module attributes {stable_mosaic.version = 11 : i64} {
  func.func @_attention_full_kernel(%arg0: i32, %arg1: memref<1x8x96xbf16, #tpu.memory_space<vmem>>, %arg2: memref<1x1x8xf32, #tpu.memory_space<vmem>>, %arg3: memref<1x8x32xbf16, #tpu.memory_space<vmem>>) attributes {dimension_semantics = [#tpu.dimension_semantics<parallel>], iteration_bounds = array<i64: 2>, scalar_prefetch = 0 : i64, scratch_operands = 0 : i64, tpu.core_type = #tpu.core_type<tc>, window_params = [{transform_indices = @transform_0, window_bounds = array<i64: 1, 8, 96>}, {transform_indices = @transform_1, window_bounds = array<i64: 1, 1, 8>}, {transform_indices = @transform_2, window_bounds = array<i64: 1, 8, 32>}]} {
    %c0 = arith.constant 0 : index
    %c0_0 = arith.constant 0 : index
    %c0_1 = arith.constant 0 : index
    %0 = vector.load %arg2[%c0, %c0_0, %c0_1] : memref<1x1x8xf32, #tpu.memory_space<vmem>>, vector<1x1x8xf32>
    %1 = vector.shape_cast %0 : vector<1x1x8xf32> to vector<1x8xf32>
    %c0_2 = arith.constant 0 : index
    %c0_3 = arith.constant 0 : index
    %c0_4 = arith.constant 0 : index
    %2 = vector.load %arg1[%c0_2, %c0_3, %c0_4] : memref<1x8x96xbf16, #tpu.memory_space<vmem>>, vector<1x8x16xbf16>
    %3 = vector.shape_cast %2 : vector<1x8x16xbf16> to vector<8x16xbf16>
    %c0_5 = arith.constant 0 : index
    %c0_6 = arith.constant 0 : index
    %c32 = arith.constant 32 : index
    %4 = vector.load %arg1[%c0_5, %c0_6, %c32] : memref<1x8x96xbf16, #tpu.memory_space<vmem>>, vector<1x8x16xbf16>
    %5 = vector.shape_cast %4 : vector<1x8x16xbf16> to vector<8x16xbf16>
    %c0_7 = arith.constant 0 : index
    %c0_8 = arith.constant 0 : index
    %c64 = arith.constant 64 : index
    %6 = vector.load %arg1[%c0_7, %c0_8, %c64] : memref<1x8x96xbf16, #tpu.memory_space<vmem>>, vector<1x8x16xbf16>
    %7 = vector.shape_cast %6 : vector<1x8x16xbf16> to vector<8x16xbf16>
    %cst = arith.constant 2.500000e-01 : bf16
    %8 = vector.broadcast %cst : bf16 to vector<8x16xbf16>
    %9 = arith.mulf %3, %8 : vector<8x16xbf16>
    %cst_9 = arith.constant dense<0.000000e+00> : vector<8x8xf32>
    %10 = tpu.matmul %9, %5, %cst_9 {dimension_numbers = #tpu.dot_dimension_numbers<[1], [1], [0], [0], [0, 0, 1, 0], [], []>} : vector<8x16xbf16>, vector<8x16xbf16>, vector<8x8xf32> -> vector<8x8xf32>
    %11 = vector.broadcast %1 : vector<1x8xf32> to vector<8x8xf32>
    %12 = arith.addf %10, %11 : vector<8x8xf32>
    %cst_10 = arith.constant dense<0xFF800000> : vector<8xf32>
    %13 = vector.multi_reduction <maximumf>, %12, %cst_10 [1] : vector<8x8xf32> to vector<8xf32>
    %14 = vector.shape_cast %13 : vector<8xf32> to vector<8x1xf32>
    %15 = vector.broadcast %14 : vector<8x1xf32> to vector<8x8xf32>
    %16 = arith.subf %12, %15 : vector<8x8xf32>
    %17 = math.exp %16 : vector<8x8xf32>
    %cst_11 = arith.constant dense<0.000000e+00> : vector<8xf32>
    %18 = vector.multi_reduction <add>, %17, %cst_11 [1] : vector<8x8xf32> to vector<8xf32>
    %19 = vector.shape_cast %18 : vector<8xf32> to vector<8x1xf32>
    %20 = arith.truncf %17 : vector<8x8xf32> to vector<8x8xbf16>
    %cst_12 = arith.constant dense<0.000000e+00> : vector<8x16xf32>
    %21 = tpu.matmul %20, %7, %cst_12 {dimension_numbers = #tpu.dot_dimension_numbers<[1], [0], [0], [1], [0, 0, 1, 1], [], []>} : vector<8x8xbf16>, vector<8x16xbf16>, vector<8x16xf32> -> vector<8x16xf32>
    %22 = tpu.reciprocal %19 {approx = true} : vector<8x1xf32> -> vector<8x1xf32>
    %23 = vector.broadcast %22 : vector<8x1xf32> to vector<8x16xf32>
    %24 = arith.mulf %21, %23 : vector<8x16xf32>
    %c0_13 = arith.constant 0 : index
    %c0_14 = arith.constant 0 : index
    %c16 = arith.constant 16 : index
    %25 = vector.load %arg1[%c0_13, %c0_14, %c16] : memref<1x8x96xbf16, #tpu.memory_space<vmem>>, vector<1x8x16xbf16>
    %26 = vector.shape_cast %25 : vector<1x8x16xbf16> to vector<8x16xbf16>
    %c0_15 = arith.constant 0 : index
    %c0_16 = arith.constant 0 : index
    %c48 = arith.constant 48 : index
    %27 = vector.load %arg1[%c0_15, %c0_16, %c48] : memref<1x8x96xbf16, #tpu.memory_space<vmem>>, vector<1x8x16xbf16>
    %28 = vector.shape_cast %27 : vector<1x8x16xbf16> to vector<8x16xbf16>
    %c0_17 = arith.constant 0 : index
    %c0_18 = arith.constant 0 : index
    %c80 = arith.constant 80 : index
    %29 = vector.load %arg1[%c0_17, %c0_18, %c80] : memref<1x8x96xbf16, #tpu.memory_space<vmem>>, vector<1x8x16xbf16>
    %30 = vector.shape_cast %29 : vector<1x8x16xbf16> to vector<8x16xbf16>
    %cst_19 = arith.constant 2.500000e-01 : bf16
    %31 = vector.broadcast %cst_19 : bf16 to vector<8x16xbf16>
    %32 = arith.mulf %26, %31 : vector<8x16xbf16>
    %cst_20 = arith.constant dense<0.000000e+00> : vector<8x8xf32>
    %33 = tpu.matmul %32, %28, %cst_20 {dimension_numbers = #tpu.dot_dimension_numbers<[1], [1], [0], [0], [0, 0, 1, 0], [], []>} : vector<8x16xbf16>, vector<8x16xbf16>, vector<8x8xf32> -> vector<8x8xf32>
    %34 = vector.broadcast %1 : vector<1x8xf32> to vector<8x8xf32>
    %35 = arith.addf %33, %34 : vector<8x8xf32>
    %cst_21 = arith.constant dense<0xFF800000> : vector<8xf32>
    %36 = vector.multi_reduction <maximumf>, %35, %cst_21 [1] : vector<8x8xf32> to vector<8xf32>
    %37 = vector.shape_cast %36 : vector<8xf32> to vector<8x1xf32>
    %38 = vector.broadcast %37 : vector<8x1xf32> to vector<8x8xf32>
    %39 = arith.subf %35, %38 : vector<8x8xf32>
    %40 = math.exp %39 : vector<8x8xf32>
    %cst_22 = arith.constant dense<0.000000e+00> : vector<8xf32>
    %41 = vector.multi_reduction <add>, %40, %cst_22 [1] : vector<8x8xf32> to vector<8xf32>
    %42 = vector.shape_cast %41 : vector<8xf32> to vector<8x1xf32>
    %43 = arith.truncf %40 : vector<8x8xf32> to vector<8x8xbf16>
    %cst_23 = arith.constant dense<0.000000e+00> : vector<8x16xf32>
    %44 = tpu.matmul %43, %30, %cst_23 {dimension_numbers = #tpu.dot_dimension_numbers<[1], [0], [0], [1], [0, 0, 1, 1], [], []>} : vector<8x8xbf16>, vector<8x16xbf16>, vector<8x16xf32> -> vector<8x16xf32>
    %45 = tpu.reciprocal %42 {approx = true} : vector<8x1xf32> -> vector<8x1xf32>
    %46 = vector.broadcast %45 : vector<8x1xf32> to vector<8x16xf32>
    %47 = arith.mulf %44, %46 : vector<8x16xf32>
    %48 = tpu.concatenate %24, %47 in 1 : vector<8x16xf32>, vector<8x16xf32> -> vector<8x32xf32>
    %49 = arith.truncf %48 : vector<8x32xf32> to vector<8x32xbf16>
    %c0_24 = arith.constant 0 : index
    %c0_25 = arith.constant 0 : index
    %c0_26 = arith.constant 0 : index
    %50 = vector.load %arg3[%c0_24, %c0_25, %c0_26] : memref<1x8x32xbf16, #tpu.memory_space<vmem>>, vector<1x8x32xbf16>
    %51 = vector.shape_cast %50 : vector<1x8x32xbf16> to vector<8x32xbf16>
    %52 = vector.shape_cast %49 : vector<8x32xbf16> to vector<1x8x32xbf16>
    tpu.vector_store %arg3[%c0_24, %c0_25, %c0_26], %52 {strides = array<i32>} : memref<1x8x32xbf16, #tpu.memory_space<vmem>>, vector<1x8x32xbf16>,
    return
  }
  func.func @transform_0(%arg0: i32) -> (i32, i32, i32) {
    %c0_i32 = arith.constant 0 : i32
    %c0_i32_0 = arith.constant 0 : i32
    %c0_i32_1 = arith.constant 0 : i32
    return %arg0, %c0_i32, %c0_i32_0 : i32, i32, i32
  }
  func.func @transform_1(%arg0: i32) -> (i32, i32, i32) {
    %c0_i32 = arith.constant 0 : i32
    %c0_i32_0 = arith.constant 0 : i32
    %c0_i32_1 = arith.constant 0 : i32
    return %arg0, %c0_i32, %c0_i32_0 : i32, i32, i32
  }
  func.func @transform_2(%arg0: i32) -> (i32, i32, i32) {
    %c0_i32 = arith.constant 0 : i32
    %c0_i32_0 = arith.constant 0 : i32
    %c0_i32_1 = arith.constant 0 : i32
    return %arg0, %c0_i32, %c0_i32_0 : i32, i32, i32
  }
}

module attributes {stable_mosaic.version = 11 : i64} {
  func.func @_matmul_add_ln_kernel(%arg0: i32, %arg1: i32, %arg2: memref<16x32xbf16, #tpu.memory_space<vmem>>, %arg3: memref<32x32xbf16, #tpu.memory_space<vmem>>, %arg4: memref<1x32xf32, #tpu.memory_space<vmem>>, %arg5: memref<16x32xbf16, #tpu.memory_space<vmem>>, %arg6: memref<1x32xf32, #tpu.memory_space<vmem>>, %arg7: memref<1x32xf32, #tpu.memory_space<vmem>>, %arg8: memref<16x32xbf16, #tpu.memory_space<vmem>>, %arg9: memref<16x32xf32, #tpu.memory_space<vmem>>) attributes {dimension_semantics = [#tpu.dimension_semantics<parallel>, #tpu.dimension_semantics<arbitrary>], iteration_bounds = array<i64: 1, 1>, scalar_prefetch = 0 : i64, scratch_operands = 1 : i64, tpu.core_type = #tpu.core_type<tc>, window_params = [{transform_indices = @transform_0, window_bounds = array<i64: 16, 32>}, {transform_indices = @transform_1, window_bounds = array<i64: 32, 32>}, {pipeline_mode = #tpu.pipeline_mode<synchronous>, transform_indices = @transform_2, window_bounds = array<i64: 1, 32>}, {transform_indices = @transform_3, window_bounds = array<i64: 16, 32>}, {pipeline_mode = #tpu.pipeline_mode<synchronous>, transform_indices = @transform_4, window_bounds = array<i64: 1, 32>}, {pipeline_mode = #tpu.pipeline_mode<synchronous>, transform_indices = @transform_5, window_bounds = array<i64: 1, 32>}, {transform_indices = @transform_6, window_bounds = array<i64: 16, 32>}]} {
    %c0_i32 = arith.constant 0 : i32
    %0 = arith.cmpi eq, %arg1, %c0_i32 : i32
    %1 = arith.extui %0 : i1 to i32
    %c0_i32_0 = arith.constant 0 : i32
    %2 = arith.cmpi ne, %1, %c0_i32_0 : i32
    scf.if %2 {
      %cst_10 = arith.constant 0.000000e+00 : f32
      %12 = vector.broadcast %cst_10 : f32 to vector<16x32xf32>
      %c0_11 = arith.constant 0 : index
      %c0_12 = arith.constant 0 : index
      %13 = vector.load %arg9[%c0_11, %c0_12] : memref<16x32xf32, #tpu.memory_space<vmem>>, vector<16x32xf32>
      tpu.vector_store %arg9[%c0_11, %c0_12], %12 {strides = array<i32>} : memref<16x32xf32, #tpu.memory_space<vmem>>, vector<16x32xf32>,
    } else {
    }
    %c0 = arith.constant 0 : index
    %c0_1 = arith.constant 0 : index
    %3 = vector.load %arg9[%c0, %c0_1] : memref<16x32xf32, #tpu.memory_space<vmem>>, vector<16x32xf32>
    %c0_2 = arith.constant 0 : index
    %c0_3 = arith.constant 0 : index
    %4 = vector.load %arg2[%c0_2, %c0_3] : memref<16x32xbf16, #tpu.memory_space<vmem>>, vector<16x32xbf16>
    %c0_4 = arith.constant 0 : index
    %c0_5 = arith.constant 0 : index
    %5 = vector.load %arg3[%c0_4, %c0_5] : memref<32x32xbf16, #tpu.memory_space<vmem>>, vector<32x32xbf16>
    %cst = arith.constant dense<0.000000e+00> : vector<16x32xf32>
    %6 = tpu.matmul %4, %5, %cst {dimension_numbers = #tpu.dot_dimension_numbers<[1], [0], [0], [1], [0, 0, 1, 1], [], []>} : vector<16x32xbf16>, vector<32x32xbf16>, vector<16x32xf32> -> vector<16x32xf32>
    %7 = arith.addf %3, %6 : vector<16x32xf32>
    %c0_6 = arith.constant 0 : index
    %c0_7 = arith.constant 0 : index
    %8 = vector.load %arg9[%c0_6, %c0_7] : memref<16x32xf32, #tpu.memory_space<vmem>>, vector<16x32xf32>
    tpu.vector_store %arg9[%c0_6, %c0_7], %7 {strides = array<i32>} : memref<16x32xf32, #tpu.memory_space<vmem>>, vector<16x32xf32>,
    %c0_i32_8 = arith.constant 0 : i32
    %9 = arith.cmpi eq, %arg1, %c0_i32_8 : i32
    %10 = arith.extui %9 : i1 to i32
    %c0_i32_9 = arith.constant 0 : i32
    %11 = arith.cmpi ne, %10, %c0_i32_9 : i32
    scf.if %11 {
      %c0_10 = arith.constant 0 : index
      %c0_11 = arith.constant 0 : index
      %12 = vector.load %arg9[%c0_10, %c0_11] : memref<16x32xf32, #tpu.memory_space<vmem>>, vector<16x32xf32>
      %c0_12 = arith.constant 0 : index
      %c0_13 = arith.constant 0 : index
      %13 = vector.load %arg4[%c0_12, %c0_13] : memref<1x32xf32, #tpu.memory_space<vmem>>, vector<1x32xf32>
      %14 = vector.broadcast %13 : vector<1x32xf32> to vector<16x32xf32>
      %15 = arith.addf %12, %14 : vector<16x32xf32>
      %c0_14 = arith.constant 0 : index
      %c0_15 = arith.constant 0 : index
      %16 = vector.load %arg5[%c0_14, %c0_15] : memref<16x32xbf16, #tpu.memory_space<vmem>>, vector<16x32xbf16>
      %17 = arith.extf %16 : vector<16x32xbf16> to vector<16x32xf32>
      %18 = arith.addf %15, %17 : vector<16x32xf32>
      %c0_16 = arith.constant 0 : index
      %c0_17 = arith.constant 0 : index
      %19 = vector.load %arg6[%c0_16, %c0_17] : memref<1x32xf32, #tpu.memory_space<vmem>>, vector<1x32xf32>
      %c0_18 = arith.constant 0 : index
      %c0_19 = arith.constant 0 : index
      %20 = vector.load %arg7[%c0_18, %c0_19] : memref<1x32xf32, #tpu.memory_space<vmem>>, vector<1x32xf32>
      %cst_20 = arith.constant dense<0.000000e+00> : vector<16xf32>
      %21 = vector.multi_reduction <add>, %18, %cst_20 [1] : vector<16x32xf32> to vector<16xf32>
      %22 = vector.shape_cast %21 : vector<16xf32> to vector<16x1xf32>
      %cst_21 = arith.constant 3.200000e+01 : f32
      %23 = vector.broadcast %cst_21 : f32 to vector<16x1xf32>
      %24 = arith.divf %22, %23 : vector<16x1xf32>
      %25 = vector.broadcast %24 : vector<16x1xf32> to vector<16x32xf32>
      %26 = arith.subf %18, %25 : vector<16x32xf32>
      %27 = arith.mulf %26, %26 : vector<16x32xf32>
      %cst_22 = arith.constant dense<0.000000e+00> : vector<16xf32>
      %28 = vector.multi_reduction <add>, %27, %cst_22 [1] : vector<16x32xf32> to vector<16xf32>
      %29 = vector.shape_cast %28 : vector<16xf32> to vector<16x1xf32>
      %cst_23 = arith.constant 3.200000e+01 : f32
      %30 = vector.broadcast %cst_23 : f32 to vector<16x1xf32>
      %31 = arith.divf %29, %30 : vector<16x1xf32>
      %cst_24 = arith.constant 9.99999974E-6 : f32
      %32 = vector.broadcast %cst_24 : f32 to vector<16x1xf32>
      %33 = arith.addf %31, %32 : vector<16x1xf32>
      %34 = math.rsqrt %33 : vector<16x1xf32>
      %35 = vector.broadcast %34 : vector<16x1xf32> to vector<16x32xf32>
      %36 = arith.mulf %26, %35 : vector<16x32xf32>
      %37 = vector.broadcast %19 : vector<1x32xf32> to vector<16x32xf32>
      %38 = arith.mulf %36, %37 : vector<16x32xf32>
      %39 = vector.broadcast %20 : vector<1x32xf32> to vector<16x32xf32>
      %40 = arith.addf %38, %39 : vector<16x32xf32>
      %41 = arith.truncf %40 : vector<16x32xf32> to vector<16x32xbf16>
      %c0_25 = arith.constant 0 : index
      %c0_26 = arith.constant 0 : index
      %42 = vector.load %arg8[%c0_25, %c0_26] : memref<16x32xbf16, #tpu.memory_space<vmem>>, vector<16x32xbf16>
      tpu.vector_store %arg8[%c0_25, %c0_26], %41 {strides = array<i32>} : memref<16x32xbf16, #tpu.memory_space<vmem>>, vector<16x32xbf16>,
    } else {
    }
    return
  }
  func.func @transform_0(%arg0: i32, %arg1: i32) -> (i32, i32) {
    %c0_i32 = arith.constant 0 : i32
    return %arg0, %arg1 : i32, i32
  }
  func.func @transform_1(%arg0: i32, %arg1: i32) -> (i32, i32) {
    %c0_i32 = arith.constant 0 : i32
    %c0_i32_0 = arith.constant 0 : i32
    return %arg1, %c0_i32 : i32, i32
  }
  func.func @transform_2(%arg0: i32, %arg1: i32) -> (i32, i32) {
    %c0_i32 = arith.constant 0 : i32
    %c0_i32_0 = arith.constant 0 : i32
    %c0_i32_1 = arith.constant 0 : i32
    return %c0_i32, %c0_i32_0 : i32, i32
  }
  func.func @transform_3(%arg0: i32, %arg1: i32) -> (i32, i32) {
    %c0_i32 = arith.constant 0 : i32
    %c0_i32_0 = arith.constant 0 : i32
    return %arg0, %c0_i32 : i32, i32
  }
  func.func @transform_4(%arg0: i32, %arg1: i32) -> (i32, i32) {
    %c0_i32 = arith.constant 0 : i32
    %c0_i32_0 = arith.constant 0 : i32
    %c0_i32_1 = arith.constant 0 : i32
    return %c0_i32, %c0_i32_0 : i32, i32
  }
  func.func @transform_5(%arg0: i32, %arg1: i32) -> (i32, i32) {
    %c0_i32 = arith.constant 0 : i32
    %c0_i32_0 = arith.constant 0 : i32
    %c0_i32_1 = arith.constant 0 : i32
    return %c0_i32, %c0_i32_0 : i32, i32
  }
  func.func @transform_6(%arg0: i32, %arg1: i32) -> (i32, i32) {
    %c0_i32 = arith.constant 0 : i32
    %c0_i32_0 = arith.constant 0 : i32
    return %arg0, %c0_i32 : i32, i32
  }
}

module attributes {stable_mosaic.version = 11 : i64} {
  func.func @_matmul_add_ln_kernel(%arg0: i32, %arg1: i32, %arg2: memref<16x64xbf16, #tpu.memory_space<vmem>>, %arg3: memref<64x32xbf16, #tpu.memory_space<vmem>>, %arg4: memref<1x32xf32, #tpu.memory_space<vmem>>, %arg5: memref<16x32xbf16, #tpu.memory_space<vmem>>, %arg6: memref<1x32xf32, #tpu.memory_space<vmem>>, %arg7: memref<1x32xf32, #tpu.memory_space<vmem>>, %arg8: memref<16x32xbf16, #tpu.memory_space<vmem>>, %arg9: memref<16x32xf32, #tpu.memory_space<vmem>>) attributes {dimension_semantics = [#tpu.dimension_semantics<parallel>, #tpu.dimension_semantics<arbitrary>], iteration_bounds = array<i64: 1, 1>, scalar_prefetch = 0 : i64, scratch_operands = 1 : i64, tpu.core_type = #tpu.core_type<tc>, window_params = [{transform_indices = @transform_0, window_bounds = array<i64: 16, 64>}, {transform_indices = @transform_1, window_bounds = array<i64: 64, 32>}, {pipeline_mode = #tpu.pipeline_mode<synchronous>, transform_indices = @transform_2, window_bounds = array<i64: 1, 32>}, {transform_indices = @transform_3, window_bounds = array<i64: 16, 32>}, {pipeline_mode = #tpu.pipeline_mode<synchronous>, transform_indices = @transform_4, window_bounds = array<i64: 1, 32>}, {pipeline_mode = #tpu.pipeline_mode<synchronous>, transform_indices = @transform_5, window_bounds = array<i64: 1, 32>}, {transform_indices = @transform_6, window_bounds = array<i64: 16, 32>}]} {
    %c0_i32 = arith.constant 0 : i32
    %0 = arith.cmpi eq, %arg1, %c0_i32 : i32
    %1 = arith.extui %0 : i1 to i32
    %c0_i32_0 = arith.constant 0 : i32
    %2 = arith.cmpi ne, %1, %c0_i32_0 : i32
    scf.if %2 {
      %cst_10 = arith.constant 0.000000e+00 : f32
      %12 = vector.broadcast %cst_10 : f32 to vector<16x32xf32>
      %c0_11 = arith.constant 0 : index
      %c0_12 = arith.constant 0 : index
      %13 = vector.load %arg9[%c0_11, %c0_12] : memref<16x32xf32, #tpu.memory_space<vmem>>, vector<16x32xf32>
      tpu.vector_store %arg9[%c0_11, %c0_12], %12 {strides = array<i32>} : memref<16x32xf32, #tpu.memory_space<vmem>>, vector<16x32xf32>,
    } else {
    }
    %c0 = arith.constant 0 : index
    %c0_1 = arith.constant 0 : index
    %3 = vector.load %arg9[%c0, %c0_1] : memref<16x32xf32, #tpu.memory_space<vmem>>, vector<16x32xf32>
    %c0_2 = arith.constant 0 : index
    %c0_3 = arith.constant 0 : index
    %4 = vector.load %arg2[%c0_2, %c0_3] : memref<16x64xbf16, #tpu.memory_space<vmem>>, vector<16x64xbf16>
    %c0_4 = arith.constant 0 : index
    %c0_5 = arith.constant 0 : index
    %5 = vector.load %arg3[%c0_4, %c0_5] : memref<64x32xbf16, #tpu.memory_space<vmem>>, vector<64x32xbf16>
    %cst = arith.constant dense<0.000000e+00> : vector<16x32xf32>
    %6 = tpu.matmul %4, %5, %cst {dimension_numbers = #tpu.dot_dimension_numbers<[1], [0], [0], [1], [0, 0, 1, 1], [], []>} : vector<16x64xbf16>, vector<64x32xbf16>, vector<16x32xf32> -> vector<16x32xf32>
    %7 = arith.addf %3, %6 : vector<16x32xf32>
    %c0_6 = arith.constant 0 : index
    %c0_7 = arith.constant 0 : index
    %8 = vector.load %arg9[%c0_6, %c0_7] : memref<16x32xf32, #tpu.memory_space<vmem>>, vector<16x32xf32>
    tpu.vector_store %arg9[%c0_6, %c0_7], %7 {strides = array<i32>} : memref<16x32xf32, #tpu.memory_space<vmem>>, vector<16x32xf32>,
    %c0_i32_8 = arith.constant 0 : i32
    %9 = arith.cmpi eq, %arg1, %c0_i32_8 : i32
    %10 = arith.extui %9 : i1 to i32
    %c0_i32_9 = arith.constant 0 : i32
    %11 = arith.cmpi ne, %10, %c0_i32_9 : i32
    scf.if %11 {
      %c0_10 = arith.constant 0 : index
      %c0_11 = arith.constant 0 : index
      %12 = vector.load %arg9[%c0_10, %c0_11] : memref<16x32xf32, #tpu.memory_space<vmem>>, vector<16x32xf32>
      %c0_12 = arith.constant 0 : index
      %c0_13 = arith.constant 0 : index
      %13 = vector.load %arg4[%c0_12, %c0_13] : memref<1x32xf32, #tpu.memory_space<vmem>>, vector<1x32xf32>
      %14 = vector.broadcast %13 : vector<1x32xf32> to vector<16x32xf32>
      %15 = arith.addf %12, %14 : vector<16x32xf32>
      %c0_14 = arith.constant 0 : index
      %c0_15 = arith.constant 0 : index
      %16 = vector.load %arg5[%c0_14, %c0_15] : memref<16x32xbf16, #tpu.memory_space<vmem>>, vector<16x32xbf16>
      %17 = arith.extf %16 : vector<16x32xbf16> to vector<16x32xf32>
      %18 = arith.addf %15, %17 : vector<16x32xf32>
      %c0_16 = arith.constant 0 : index
      %c0_17 = arith.constant 0 : index
      %19 = vector.load %arg6[%c0_16, %c0_17] : memref<1x32xf32, #tpu.memory_space<vmem>>, vector<1x32xf32>
      %c0_18 = arith.constant 0 : index
      %c0_19 = arith.constant 0 : index
      %20 = vector.load %arg7[%c0_18, %c0_19] : memref<1x32xf32, #tpu.memory_space<vmem>>, vector<1x32xf32>
      %cst_20 = arith.constant dense<0.000000e+00> : vector<16xf32>
      %21 = vector.multi_reduction <add>, %18, %cst_20 [1] : vector<16x32xf32> to vector<16xf32>
      %22 = vector.shape_cast %21 : vector<16xf32> to vector<16x1xf32>
      %cst_21 = arith.constant 3.200000e+01 : f32
      %23 = vector.broadcast %cst_21 : f32 to vector<16x1xf32>
      %24 = arith.divf %22, %23 : vector<16x1xf32>
      %25 = vector.broadcast %24 : vector<16x1xf32> to vector<16x32xf32>
      %26 = arith.subf %18, %25 : vector<16x32xf32>
      %27 = arith.mulf %26, %26 : vector<16x32xf32>
      %cst_22 = arith.constant dense<0.000000e+00> : vector<16xf32>
      %28 = vector.multi_reduction <add>, %27, %cst_22 [1] : vector<16x32xf32> to vector<16xf32>
      %29 = vector.shape_cast %28 : vector<16xf32> to vector<16x1xf32>
      %cst_23 = arith.constant 3.200000e+01 : f32
      %30 = vector.broadcast %cst_23 : f32 to vector<16x1xf32>
      %31 = arith.divf %29, %30 : vector<16x1xf32>
      %cst_24 = arith.constant 9.99999974E-6 : f32
      %32 = vector.broadcast %cst_24 : f32 to vector<16x1xf32>
      %33 = arith.addf %31, %32 : vector<16x1xf32>
      %34 = math.rsqrt %33 : vector<16x1xf32>
      %35 = vector.broadcast %34 : vector<16x1xf32> to vector<16x32xf32>
      %36 = arith.mulf %26, %35 : vector<16x32xf32>
      %37 = vector.broadcast %19 : vector<1x32xf32> to vector<16x32xf32>
      %38 = arith.mulf %36, %37 : vector<16x32xf32>
      %39 = vector.broadcast %20 : vector<1x32xf32> to vector<16x32xf32>
      %40 = arith.addf %38, %39 : vector<16x32xf32>
      %41 = arith.truncf %40 : vector<16x32xf32> to vector<16x32xbf16>
      %c0_25 = arith.constant 0 : index
      %c0_26 = arith.constant 0 : index
      %42 = vector.load %arg8[%c0_25, %c0_26] : memref<16x32xbf16, #tpu.memory_space<vmem>>, vector<16x32xbf16>
      tpu.vector_store %arg8[%c0_25, %c0_26], %41 {strides = array<i32>} : memref<16x32xbf16, #tpu.memory_space<vmem>>, vector<16x32xbf16>,
    } else {
    }
    return
  }
  func.func @transform_0(%arg0: i32, %arg1: i32) -> (i32, i32) {
    %c0_i32 = arith.constant 0 : i32
    return %arg0, %arg1 : i32, i32
  }
  func.func @transform_1(%arg0: i32, %arg1: i32) -> (i32, i32) {
    %c0_i32 = arith.constant 0 : i32
    %c0_i32_0 = arith.constant 0 : i32
    return %arg1, %c0_i32 : i32, i32
  }
  func.func @transform_2(%arg0: i32, %arg1: i32) -> (i32, i32) {
    %c0_i32 = arith.constant 0 : i32
    %c0_i32_0 = arith.constant 0 : i32
    %c0_i32_1 = arith.constant 0 : i32
    return %c0_i32, %c0_i32_0 : i32, i32
  }
  func.func @transform_3(%arg0: i32, %arg1: i32) -> (i32, i32) {
    %c0_i32 = arith.constant 0 : i32
    %c0_i32_0 = arith.constant 0 : i32
    return %arg0, %c0_i32 : i32, i32
  }
  func.func @transform_4(%arg0: i32, %arg1: i32) -> (i32, i32) {
    %c0_i32 = arith.constant 0 : i32
    %c0_i32_0 = arith.constant 0 : i32
    %c0_i32_1 = arith.constant 0 : i32
    return %c0_i32, %c0_i32_0 : i32, i32
  }
  func.func @transform_5(%arg0: i32, %arg1: i32) -> (i32, i32) {
    %c0_i32 = arith.constant 0 : i32
    %c0_i32_0 = arith.constant 0 : i32
    %c0_i32_1 = arith.constant 0 : i32
    return %c0_i32, %c0_i32_0 : i32, i32
  }
  func.func @transform_6(%arg0: i32, %arg1: i32) -> (i32, i32) {
    %c0_i32 = arith.constant 0 : i32
    %c0_i32_0 = arith.constant 0 : i32
    return %arg0, %c0_i32 : i32, i32
  }
}

module attributes {stable_mosaic.version = 11 : i64} {
  func.func @_matmul_bias_kernel(%arg0: i32, %arg1: i32, %arg2: i32, %arg3: memref<16x32xbf16, #tpu.memory_space<vmem>>, %arg4: memref<32x64xbf16, #tpu.memory_space<vmem>>, %arg5: memref<1x64xf32, #tpu.memory_space<vmem>>, %arg6: memref<16x64xbf16, #tpu.memory_space<vmem>>, %arg7: memref<16x64xf32, #tpu.memory_space<vmem>>) attributes {dimension_semantics = [#tpu.dimension_semantics<parallel>, #tpu.dimension_semantics<parallel>, #tpu.dimension_semantics<arbitrary>], iteration_bounds = array<i64: 1, 1, 1>, scalar_prefetch = 0 : i64, scratch_operands = 1 : i64, tpu.core_type = #tpu.core_type<tc>, window_params = [{transform_indices = @transform_0, window_bounds = array<i64: 16, 32>}, {transform_indices = @transform_1, window_bounds = array<i64: 32, 64>}, {transform_indices = @transform_2, window_bounds = array<i64: 1, 64>}, {transform_indices = @transform_3, window_bounds = array<i64: 16, 64>}]} {
    %c0_i32 = arith.constant 0 : i32
    %0 = arith.cmpi eq, %arg2, %c0_i32 : i32
    %1 = arith.extui %0 : i1 to i32
    %c0_i32_0 = arith.constant 0 : i32
    %2 = arith.cmpi ne, %1, %c0_i32_0 : i32
    scf.if %2 {
      %cst_10 = arith.constant 0.000000e+00 : f32
      %12 = vector.broadcast %cst_10 : f32 to vector<16x64xf32>
      %c0_11 = arith.constant 0 : index
      %c0_12 = arith.constant 0 : index
      %13 = vector.load %arg7[%c0_11, %c0_12] : memref<16x64xf32, #tpu.memory_space<vmem>>, vector<16x64xf32>
      tpu.vector_store %arg7[%c0_11, %c0_12], %12 {strides = array<i32>} : memref<16x64xf32, #tpu.memory_space<vmem>>, vector<16x64xf32>,
    } else {
    }
    %c0 = arith.constant 0 : index
    %c0_1 = arith.constant 0 : index
    %3 = vector.load %arg7[%c0, %c0_1] : memref<16x64xf32, #tpu.memory_space<vmem>>, vector<16x64xf32>
    %c0_2 = arith.constant 0 : index
    %c0_3 = arith.constant 0 : index
    %4 = vector.load %arg3[%c0_2, %c0_3] : memref<16x32xbf16, #tpu.memory_space<vmem>>, vector<16x32xbf16>
    %c0_4 = arith.constant 0 : index
    %c0_5 = arith.constant 0 : index
    %5 = vector.load %arg4[%c0_4, %c0_5] : memref<32x64xbf16, #tpu.memory_space<vmem>>, vector<32x64xbf16>
    %cst = arith.constant dense<0.000000e+00> : vector<16x64xf32>
    %6 = tpu.matmul %4, %5, %cst {dimension_numbers = #tpu.dot_dimension_numbers<[1], [0], [0], [1], [0, 0, 1, 1], [], []>} : vector<16x32xbf16>, vector<32x64xbf16>, vector<16x64xf32> -> vector<16x64xf32>
    %7 = arith.addf %3, %6 : vector<16x64xf32>
    %c0_6 = arith.constant 0 : index
    %c0_7 = arith.constant 0 : index
    %8 = vector.load %arg7[%c0_6, %c0_7] : memref<16x64xf32, #tpu.memory_space<vmem>>, vector<16x64xf32>
    tpu.vector_store %arg7[%c0_6, %c0_7], %7 {strides = array<i32>} : memref<16x64xf32, #tpu.memory_space<vmem>>, vector<16x64xf32>,
    %c0_i32_8 = arith.constant 0 : i32
    %9 = arith.cmpi eq, %arg2, %c0_i32_8 : i32
    %10 = arith.extui %9 : i1 to i32
    %c0_i32_9 = arith.constant 0 : i32
    %11 = arith.cmpi ne, %10, %c0_i32_9 : i32
    scf.if %11 {
      %c0_10 = arith.constant 0 : index
      %c0_11 = arith.constant 0 : index
      %12 = vector.load %arg7[%c0_10, %c0_11] : memref<16x64xf32, #tpu.memory_space<vmem>>, vector<16x64xf32>
      %c0_12 = arith.constant 0 : index
      %c0_13 = arith.constant 0 : index
      %13 = vector.load %arg5[%c0_12, %c0_13] : memref<1x64xf32, #tpu.memory_space<vmem>>, vector<1x64xf32>
      %14 = vector.broadcast %13 : vector<1x64xf32> to vector<16x64xf32>
      %15 = arith.addf %12, %14 : vector<16x64xf32>
      %cst_14 = arith.constant 5.000000e-01 : f32
      %16 = vector.broadcast %cst_14 : f32 to vector<16x64xf32>
      %17 = arith.mulf %16, %15 : vector<16x64xf32>
      %cst_15 = arith.constant 0.707106769 : f32
      %18 = vector.broadcast %cst_15 : f32 to vector<16x64xf32>
      %19 = arith.mulf %15, %18 : vector<16x64xf32>
      %20 = math.erf %19 : vector<16x64xf32>
      %cst_16 = arith.constant 1.000000e+00 : f32
      %21 = vector.broadcast %cst_16 : f32 to vector<16x64xf32>
      %22 = arith.addf %21, %20 : vector<16x64xf32>
      %23 = arith.mulf %17, %22 : vector<16x64xf32>
      %24 = arith.truncf %23 : vector<16x64xf32> to vector<16x64xbf16>
      %c0_17 = arith.constant 0 : index
      %c0_18 = arith.constant 0 : index
      %25 = vector.load %arg6[%c0_17, %c0_18] : memref<16x64xbf16, #tpu.memory_space<vmem>>, vector<16x64xbf16>
      tpu.vector_store %arg6[%c0_17, %c0_18], %24 {strides = array<i32>} : memref<16x64xbf16, #tpu.memory_space<vmem>>, vector<16x64xbf16>,
    } else {
    }
    return
  }
  func.func @transform_0(%arg0: i32, %arg1: i32, %arg2: i32) -> (i32, i32) {
    %c0_i32 = arith.constant 0 : i32
    return %arg0, %arg2 : i32, i32
  }
  func.func @transform_1(%arg0: i32, %arg1: i32, %arg2: i32) -> (i32, i32) {
    %c0_i32 = arith.constant 0 : i32
    return %arg2, %arg1 : i32, i32
  }
  func.func @transform_2(%arg0: i32, %arg1: i32, %arg2: i32) -> (i32, i32) {
    %c0_i32 = arith.constant 0 : i32
    %c0_i32_0 = arith.constant 0 : i32
    return %c0_i32, %arg1 : i32, i32
  }
  func.func @transform_3(%arg0: i32, %arg1: i32, %arg2: i32) -> (i32, i32) {
    %c0_i32 = arith.constant 0 : i32
    return %arg0, %arg1 : i32, i32
  }
}

module attributes {stable_mosaic.version = 11 : i64} {
  func.func @_matmul_add_ln_regress_kernel(%arg0: i32, %arg1: i32, %arg2: memref<16x64xbf16, #tpu.memory_space<vmem>>, %arg3: memref<64x32xbf16, #tpu.memory_space<vmem>>, %arg4: memref<1x32xf32, #tpu.memory_space<vmem>>, %arg5: memref<16x32xbf16, #tpu.memory_space<vmem>>, %arg6: memref<1x32xf32, #tpu.memory_space<vmem>>, %arg7: memref<1x32xf32, #tpu.memory_space<vmem>>, %arg8: memref<1x32xf32, #tpu.memory_space<vmem>>, %arg9: memref<1x1xf32, #tpu.memory_space<vmem>>, %arg10: memref<16x1xf32, #tpu.memory_space<vmem>>, %arg11: memref<16x32xf32, #tpu.memory_space<vmem>>) attributes {dimension_semantics = [#tpu.dimension_semantics<parallel>, #tpu.dimension_semantics<arbitrary>], iteration_bounds = array<i64: 1, 1>, scalar_prefetch = 0 : i64, scratch_operands = 1 : i64, tpu.core_type = #tpu.core_type<tc>, window_params = [{transform_indices = @transform_0, window_bounds = array<i64: 16, 64>}, {transform_indices = @transform_1, window_bounds = array<i64: 64, 32>}, {pipeline_mode = #tpu.pipeline_mode<synchronous>, transform_indices = @transform_2, window_bounds = array<i64: 1, 32>}, {transform_indices = @transform_3, window_bounds = array<i64: 16, 32>}, {pipeline_mode = #tpu.pipeline_mode<synchronous>, transform_indices = @transform_4, window_bounds = array<i64: 1, 32>}, {pipeline_mode = #tpu.pipeline_mode<synchronous>, transform_indices = @transform_5, window_bounds = array<i64: 1, 32>}, {pipeline_mode = #tpu.pipeline_mode<synchronous>, transform_indices = @transform_6, window_bounds = array<i64: 1, 32>}, {pipeline_mode = #tpu.pipeline_mode<synchronous>, transform_indices = @transform_7, window_bounds = array<i64: 1, 1>}, {transform_indices = @transform_8, window_bounds = array<i64: 16, 1>}]} {
    %c0_i32 = arith.constant 0 : i32
    %0 = arith.cmpi eq, %arg1, %c0_i32 : i32
    %1 = arith.extui %0 : i1 to i32
    %c0_i32_0 = arith.constant 0 : i32
    %2 = arith.cmpi ne, %1, %c0_i32_0 : i32
    scf.if %2 {
      %cst_10 = arith.constant 0.000000e+00 : f32
      %12 = vector.broadcast %cst_10 : f32 to vector<16x32xf32>
      %c0_11 = arith.constant 0 : index
      %c0_12 = arith.constant 0 : index
      %13 = vector.load %arg11[%c0_11, %c0_12] : memref<16x32xf32, #tpu.memory_space<vmem>>, vector<16x32xf32>
      tpu.vector_store %arg11[%c0_11, %c0_12], %12 {strides = array<i32>} : memref<16x32xf32, #tpu.memory_space<vmem>>, vector<16x32xf32>,
    } else {
    }
    %c0 = arith.constant 0 : index
    %c0_1 = arith.constant 0 : index
    %3 = vector.load %arg11[%c0, %c0_1] : memref<16x32xf32, #tpu.memory_space<vmem>>, vector<16x32xf32>
    %c0_2 = arith.constant 0 : index
    %c0_3 = arith.constant 0 : index
    %4 = vector.load %arg2[%c0_2, %c0_3] : memref<16x64xbf16, #tpu.memory_space<vmem>>, vector<16x64xbf16>
    %c0_4 = arith.constant 0 : index
    %c0_5 = arith.constant 0 : index
    %5 = vector.load %arg3[%c0_4, %c0_5] : memref<64x32xbf16, #tpu.memory_space<vmem>>, vector<64x32xbf16>
    %cst = arith.constant dense<0.000000e+00> : vector<16x32xf32>
    %6 = tpu.matmul %4, %5, %cst {dimension_numbers = #tpu.dot_dimension_numbers<[1], [0], [0], [1], [0, 0, 1, 1], [], []>} : vector<16x64xbf16>, vector<64x32xbf16>, vector<16x32xf32> -> vector<16x32xf32>
    %7 = arith.addf %3, %6 : vector<16x32xf32>
    %c0_6 = arith.constant 0 : index
    %c0_7 = arith.constant 0 : index
    %8 = vector.load %arg11[%c0_6, %c0_7] : memref<16x32xf32, #tpu.memory_space<vmem>>, vector<16x32xf32>
    tpu.vector_store %arg11[%c0_6, %c0_7], %7 {strides = array<i32>} : memref<16x32xf32, #tpu.memory_space<vmem>>, vector<16x32xf32>,
    %c0_i32_8 = arith.constant 0 : i32
    %9 = arith.cmpi eq, %arg1, %c0_i32_8 : i32
    %10 = arith.extui %9 : i1 to i32
    %c0_i32_9 = arith.constant 0 : i32
    %11 = arith.cmpi ne, %10, %c0_i32_9 : i32
    scf.if %11 {
      %c0_10 = arith.constant 0 : index
      %c0_11 = arith.constant 0 : index
      %12 = vector.load %arg11[%c0_10, %c0_11] : memref<16x32xf32, #tpu.memory_space<vmem>>, vector<16x32xf32>
      %c0_12 = arith.constant 0 : index
      %c0_13 = arith.constant 0 : index
      %13 = vector.load %arg4[%c0_12, %c0_13] : memref<1x32xf32, #tpu.memory_space<vmem>>, vector<1x32xf32>
      %14 = vector.broadcast %13 : vector<1x32xf32> to vector<16x32xf32>
      %15 = arith.addf %12, %14 : vector<16x32xf32>
      %c0_14 = arith.constant 0 : index
      %c0_15 = arith.constant 0 : index
      %16 = vector.load %arg5[%c0_14, %c0_15] : memref<16x32xbf16, #tpu.memory_space<vmem>>, vector<16x32xbf16>
      %17 = arith.extf %16 : vector<16x32xbf16> to vector<16x32xf32>
      %18 = arith.addf %15, %17 : vector<16x32xf32>
      %c0_16 = arith.constant 0 : index
      %c0_17 = arith.constant 0 : index
      %19 = vector.load %arg6[%c0_16, %c0_17] : memref<1x32xf32, #tpu.memory_space<vmem>>, vector<1x32xf32>
      %c0_18 = arith.constant 0 : index
      %c0_19 = arith.constant 0 : index
      %20 = vector.load %arg7[%c0_18, %c0_19] : memref<1x32xf32, #tpu.memory_space<vmem>>, vector<1x32xf32>
      %cst_20 = arith.constant dense<0.000000e+00> : vector<16xf32>
      %21 = vector.multi_reduction <add>, %18, %cst_20 [1] : vector<16x32xf32> to vector<16xf32>
      %22 = vector.shape_cast %21 : vector<16xf32> to vector<16x1xf32>
      %cst_21 = arith.constant 3.200000e+01 : f32
      %23 = vector.broadcast %cst_21 : f32 to vector<16x1xf32>
      %24 = arith.divf %22, %23 : vector<16x1xf32>
      %25 = vector.broadcast %24 : vector<16x1xf32> to vector<16x32xf32>
      %26 = arith.subf %18, %25 : vector<16x32xf32>
      %27 = arith.mulf %26, %26 : vector<16x32xf32>
      %cst_22 = arith.constant dense<0.000000e+00> : vector<16xf32>
      %28 = vector.multi_reduction <add>, %27, %cst_22 [1] : vector<16x32xf32> to vector<16xf32>
      %29 = vector.shape_cast %28 : vector<16xf32> to vector<16x1xf32>
      %cst_23 = arith.constant 3.200000e+01 : f32
      %30 = vector.broadcast %cst_23 : f32 to vector<16x1xf32>
      %31 = arith.divf %29, %30 : vector<16x1xf32>
      %cst_24 = arith.constant 9.99999974E-6 : f32
      %32 = vector.broadcast %cst_24 : f32 to vector<16x1xf32>
      %33 = arith.addf %31, %32 : vector<16x1xf32>
      %34 = math.rsqrt %33 : vector<16x1xf32>
      %35 = vector.broadcast %34 : vector<16x1xf32> to vector<16x32xf32>
      %36 = arith.mulf %26, %35 : vector<16x32xf32>
      %37 = vector.broadcast %19 : vector<1x32xf32> to vector<16x32xf32>
      %38 = arith.mulf %36, %37 : vector<16x32xf32>
      %39 = vector.broadcast %20 : vector<1x32xf32> to vector<16x32xf32>
      %40 = arith.addf %38, %39 : vector<16x32xf32>
      %c0_25 = arith.constant 0 : index
      %c0_26 = arith.constant 0 : index
      %41 = vector.load %arg8[%c0_25, %c0_26] : memref<1x32xf32, #tpu.memory_space<vmem>>, vector<1x32xf32>
      %42 = vector.broadcast %41 : vector<1x32xf32> to vector<16x32xf32>
      %43 = arith.mulf %40, %42 : vector<16x32xf32>
      %cst_27 = arith.constant dense<0.000000e+00> : vector<16xf32>
      %44 = vector.multi_reduction <add>, %43, %cst_27 [1] : vector<16x32xf32> to vector<16xf32>
      %45 = vector.shape_cast %44 : vector<16xf32> to vector<16x1xf32>
      %c0_28 = arith.constant 0 : index
      %c0_29 = arith.constant 0 : index
      %46 = vector.load %arg9[%c0_28, %c0_29] : memref<1x1xf32, #tpu.memory_space<vmem>>, vector<1x1xf32>
      %47 = vector.broadcast %46 : vector<1x1xf32> to vector<16x1xf32>
      %48 = arith.addf %45, %47 : vector<16x1xf32>
      %c0_30 = arith.constant 0 : index
      %c0_31 = arith.constant 0 : index
      %49 = vector.load %arg10[%c0_30, %c0_31] : memref<16x1xf32, #tpu.memory_space<vmem>>, vector<16x1xf32>
      tpu.vector_store %arg10[%c0_30, %c0_31], %48 {strides = array<i32>} : memref<16x1xf32, #tpu.memory_space<vmem>>, vector<16x1xf32>,
    } else {
    }
    return
  }
  func.func @transform_0(%arg0: i32, %arg1: i32) -> (i32, i32) {
    %c0_i32 = arith.constant 0 : i32
    return %arg0, %arg1 : i32, i32
  }
  func.func @transform_1(%arg0: i32, %arg1: i32) -> (i32, i32) {
    %c0_i32 = arith.constant 0 : i32
    %c0_i32_0 = arith.constant 0 : i32
    return %arg1, %c0_i32 : i32, i32
  }
  func.func @transform_2(%arg0: i32, %arg1: i32) -> (i32, i32) {
    %c0_i32 = arith.constant 0 : i32
    %c0_i32_0 = arith.constant 0 : i32
    %c0_i32_1 = arith.constant 0 : i32
    return %c0_i32, %c0_i32_0 : i32, i32
  }
  func.func @transform_3(%arg0: i32, %arg1: i32) -> (i32, i32) {
    %c0_i32 = arith.constant 0 : i32
    %c0_i32_0 = arith.constant 0 : i32
    return %arg0, %c0_i32 : i32, i32
  }
  func.func @transform_4(%arg0: i32, %arg1: i32) -> (i32, i32) {
    %c0_i32 = arith.constant 0 : i32
    %c0_i32_0 = arith.constant 0 : i32
    %c0_i32_1 = arith.constant 0 : i32
    return %c0_i32, %c0_i32_0 : i32, i32
  }
  func.func @transform_5(%arg0: i32, %arg1: i32) -> (i32, i32) {
    %c0_i32 = arith.constant 0 : i32
    %c0_i32_0 = arith.constant 0 : i32
    %c0_i32_1 = arith.constant 0 : i32
    return %c0_i32, %c0_i32_0 : i32, i32
  }
  func.func @transform_6(%arg0: i32, %arg1: i32) -> (i32, i32) {
    %c0_i32 = arith.constant 0 : i32
    %c0_i32_0 = arith.constant 0 : i32
    %c0_i32_1 = arith.constant 0 : i32
    return %c0_i32, %c0_i32_0 : i32, i32
  }
  func.func @transform_7(%arg0: i32, %arg1: i32) -> (i32, i32) {
    %c0_i32 = arith.constant 0 : i32
    %c0_i32_0 = arith.constant 0 : i32
    %c0_i32_1 = arith.constant 0 : i32
    return %c0_i32, %c0_i32_0 : i32, i32
  }
  func.func @transform_8(%arg0: i32, %arg1: i32) -> (i32, i32) {
    %c0_i32 = arith.constant 0 : i32
    %c0_i32_0 = arith.constant 0 : i32
    return %arg0, %c0_i32 : i32, i32
  }
}

</mosaic_0001>

<bundles_post_ra>
// kernel: roberta_regression_forward.13
= control target key start
LH: loop header
LB: loop body
LE: loop exit
PB: predicated region body
PF: predicated region fallthrough
CT: control target
= control target key end

     0   :  { %s565_s9 = smov 0   ;;  %s610_s0 = inlined_call_operand.vmem [shape: bf16[2,8,96], index: 0, kind: input, shape index: {}]   ;;  %s611_s1 = inlined_call_operand.vmem [shape: f32[2,1,8], index: 1, kind: input, shape index: {}]   ;;  %s612_s2 = inlined_call_operand.vmem [shape: bf16[2,8,32], index: 2, kind: output, shape index: {}]  }
   0x1 LB: > { %s461_s10 = sadd.s32 4294967295, %s540_s9   ;;  %p465_p0 = scmp.ge.s32.totalorder %s540_s9, 1  ;;  %s540_s9 = sphi %s565_s9, %s12_s9  }
   0x2   : > { %p119_p1 = scmp.lt.s32.totalorder %s540_s9, 3 }
   0x4   : > { %p120_p2 = pnand %p465_p0, %p119_p1 }
   0x5   : > { %p142_p3 = scmp.lt.s32.totalorder (!%p120_p2), %s461_s10, 1  ;;  %v542_v0 = vmov (!%p120_p2), 0.0   ;;  %vm543_vm0 = vmmov (!%p120_p2), 0   ;;  %s544_s15 = smov (!%p120_p2), 96   ;;  %vm169_vm1 = vcmask (!%p120_p2), 130048   ;;  %vm216_vm2 = vcmask (!%p120_p2), 64512  }
   0x6   : > { %123 = sbr.rel (%p120_p2) target bundleno = 1231 (0x4cf), region = 28  ;;  %485 = vmatprep.subr.bf16.mxu0 (!%p120_p2), %v542_v0  ;;  %487 = vmatprep.mubr.msk.bf16.mxu0 (!%p120_p2), %vm543_vm0, %v542_v0  ;;  %s545_s16 = smov (!%p120_p2), 64   ;;  %vm232_vm3 = vcmask (!%p120_p2), 1043456   ;;  %vm397_vm4 = vcmask (!%p120_p2), 257024  }
   0x7   : > { %491 = vmatprep.subr.bf16.mxu1 (!%p120_p2), %v542_v0  ;;  %493 = vmatprep.mubr.msk.bf16.mxu1 (!%p120_p2), %vm543_vm0, %v542_v0  ;;  %s546_s17 = smov (!%p120_p2), 80   ;;  %s547_s18 = smov (!%p120_p2), 112  }
   0x8   : > { %s548_s22 = smov (!%p120_p2), 48   ;;  %s549_s23 = smov (!%p120_p2), 16  }
   0xd   : > { %s614_s10 = smov (!%p142_p3, %s461_s10), 1 }
   0xe   : > { %s466_s11 = sshll.u32 %s614_s10, 2  ;;  %s148_s21 = scalar_lea.vmem %s611_s1, %s614_s10 }
   0xf   : > { %s145_s14 = scalar_lea.vmem %s610_s0, %s466_s11  ;;  %v468_v7 = vld [vmem:[%s148_s21] ss:$0 sm:$0xff]  ;;  %s152_s26 = scalar_lea.vmem %s612_s2, %s466_s11 }
  0x10   : > { %v156_v1 = vld [vmem:[%s145_s14] sm:$0xf] }
  0x11   : > { %v469_v2 = vcombine.low %v156_v1, %v156_v1  ;;  %v157_v5 = vmul.bf16 1048592000, %v156_v1 }
  0x13   : > { %167 = vrot.lane.b32.xlu0 %v469_v2, %s544_s15  ;;  %227 = vrot.lane.b32.xlu1 %v469_v2, %s545_s16  ;;  %v472_v6 = vcombine.low %v157_v5, %v157_v5 }
  0x17   : > { %283 = vrot.lane.b32.xlu1 %v469_v2, %s546_s17 }
  0x1b   : > { %281 = vrot.lane.b32.xlu1 %v472_v6, %s547_s18 }
  0x85   : > { %v168_v3 = vpop.permute.xlu0 %167  ;;  %v228_v14 = vpop.permute.xlu1 %227 }
  0x86   : > { %v174_v4 = vsel %vm169_vm1, %v168_v3, 0  ;;  %v234_v15 = vsel %vm232_vm3, %v228_v14, 0 }
  0x87   : > { %486 = vmatpush3.bf16.xpose.msra.mxu0 %v174_v4  ;;  %492 = vmatpush3.bf16.msra.mxu1 %v234_v15 }
  0x88   : > { %503 = vmatprep.subr.bf16.mxu0 %v542_v0  ;;  %497 = vmatprep.subr.bf16.mxu1 %v542_v0 }
  0x89   : > { %v284_v19 = vpop.permute.xlu1 %283 }
  0x8a   : > { %v289_v21 = vsel %vm169_vm1, %v284_v19, 0 }
  0x8d   : > { %v282_v23 = vpop.permute.xlu1 %281 }
  0x8e   : > { %488 = vmatmul.mubr.msk.bf16.vlgmr.msra.gmra.mrb[0].mxu0 %vm169_vm1, %v157_v5 }
  0x8f   : > { %505 = vmatprep.mubr.msk.bf16.mxu0 %vm543_vm0, %v542_v0 }
 0x161   : > { %v210_v8 = vpop.f32.mrb[0].mxu0 }
 0x162   : > { %v211_v9 = vadd.f32 %v468_v7, %v210_v8  ;;  %v489_v10 = vpop.f32.mrb[1].mxu0 }
 0x163   : > { %v213_v11 = vpop.f32.mrb[2].mxu0 }
 0x164   : > { %v490_v12 = vpop.f32.mrb[3].mxu0  ;;  %v217_v13 = vsel %vm216_vm2, %v211_v9, -inf }
 0x165   : > { %218 = vmax.xlane.f32.xlu0 %v217_v13 }
 0x17b   : > { %341 = vrot.lane.b32.xlu0 %v469_v2, %s548_s22 }
 0x1f2   : > { %v219_v16 = vpop.xlane.xlu0 %218 }
 0x1f3   : > { %v220_v17 = vsub.f32 %v211_v9, %v219_v16 }
 0x1f5   : > { %v221_v18 = vmul.f32 1.442695, %v220_v17 }
 0x1f6   : > { %v342_v34 = vpop.permute.xlu0 %341 }
 0x1f7   : > { %526 = vpow2.f32 %v221_v18  ;;  %v347_v35 = vsel %vm232_vm3, %v342_v34, 0 }
 0x1f8   : > { %504 = vmatpush3.bf16.msra.mxu0 %v347_v35 }
 0x201   : > { %v527_v20 = vpop.eup %526 }
 0x202   : > { %v226_v22 = vpack.c.bf16 %v527_v20, %v527_v20  ;;  %v223_v42 = vsel %vm216_vm2, %v527_v20, 0.0 }
 0x204   : > { %494 = vmatmul.mubr.msk.bf16.vlgmr.msra.gmra.mrb[0].mxu1 %vm216_vm2, %v226_v22 }
 0x205   : > { %498 = vmatpush3.bf16.xpose.msra.mxu1 %v289_v21  ;;  %499 = vmatprep.mubr.msk.bf16.mxu1 %vm543_vm0, %v542_v0 }
 0x20c   : > { %500 = vmatmul.mubr.msk.bf16.vlgmr.msra.gmra.mrb[4].mxu1 %vm169_vm1, %v282_v23 }
 0x2d7   : > { %v270_v24 = vpop.f32.mrb[0].mxu1 }
 0x2d8   : > { %v495_v25 = vpop.f32.mrb[1].mxu1 }
 0x2d9   : > { %v273_v26 = vpop.f32.mrb[2].mxu1 }
 0x2da   : > { %v496_v27 = vpop.f32.mrb[3].mxu1 }
 0x2df   : > { %v325_v28 = vpop.f32.mrb[4].mxu1 }
 0x2e0   : > { %v326_v29 = vadd.f32 %v468_v7, %v325_v28  ;;  %v501_v30 = vpop.f32.mrb[5].mxu1 }
 0x2e1   : > { %v328_v31 = vpop.f32.mrb[6].mxu1 }
 0x2e2   : > { %v502_v32 = vpop.f32.mrb[7].mxu1  ;;  %v331_v33 = vsel %vm216_vm2, %v326_v29, -inf }
 0x2e3   : > { %332 = vmax.xlane.f32.xlu1 %v331_v33 }
 0x370   : > { %v333_v36 = vpop.xlane.xlu1 %332 }
 0x371   : > { %v334_v37 = vsub.f32 %v326_v29, %v333_v36 }
 0x373   : > { %v335_v38 = vmul.f32 1.442695, %v334_v37 }
 0x375   : > { %528 = vpow2.f32 %v335_v38 }
 0x37f   : > { %v529_v39 = vpop.eup %528 }
 0x380   : > { %v337_v40 = vsel %vm216_vm2, %v529_v39, 0.0  ;;  %v340_v41 = vpack.c.bf16 %v529_v39, %v529_v39 }
 0x381   : > { %338 = vadd.xlane.f32.xlu1 %v337_v40 }
 0x382   : > { %506 = vmatmul.mubr.msk.bf16.vlgmr.msra.gmra.mrb[4].mxu0 %vm216_vm2, %v340_v41 }
 0x385   : > { %224 = vadd.xlane.f32.xlu1 %v223_v42 }
 0x40e   : > { %v339_v43 = vpop.xlane.xlu1 %338 }
 0x40f   : > { %530 = vrcp.f32 %v339_v43 }
 0x412   : > { %v225_v50 = vpop.xlane.xlu1 %224 }
 0x413   : > { %532 = vrcp.f32 %v225_v50 }
 0x419   : > { %v531_v44 = vpop.eup %530 }
 0x41d   : > { %v533_v51 = vpop.eup %532 }
 0x41e   : > { %v277_v52 = vmul.f32 %v533_v51, %v270_v24 }
 0x455   : > { %v383_v45 = vpop.f32.mrb[4].mxu0 }
 0x456   : > { %v390_v46 = vmul.f32 %v531_v44, %v383_v45  ;;  %v507_v47 = vpop.f32.mrb[5].mxu0 }
 0x457   : > { %v386_v48 = vpop.f32.mrb[6].mxu0 }
 0x458   : > { %392 = vrot.lane.b32.xlu1 %v390_v46, %s549_s23  ;;  %v508_v49 = vpop.f32.mrb[7].mxu0 }
 0x4ca   : > { %v393_v53 = vpop.permute.xlu1 %392 }
 0x4cb   : > { %v395_v54 = vsel %vm169_vm1, %v277_v52, %v393_v53 }
 0x4cc   : > { %v396_v55 = vpack.c.bf16 %v395_v54, %v395_v54 }
 0x4ce   : > { %398 = vst.msk [vmem:[%s152_s26] sm:$0xf] %vm397_vm4, %v396_v55 }
 0x4cf PF: > { %s12_s9 = sadd.s32 1, %s540_s9  }
 0x4d0   : > { %p9_p4 = scmp.ge.s32.totalorder %s12_s9, 4  }
 0x4d2   :  { %11 = sbr.rel (!%p9_p4) target bundleno = 1 (0x1), region = 61 }

// kernel: roberta_regression_forward.11
= control target key start
LH: loop header
LB: loop body
LE: loop exit
PB: predicated region body
PF: predicated region fallthrough
CT: control target
= control target key end

     0   :  { %vm20_vm0 = vcmask 261120   ;;  %vm72_vm1 = vcmask 257024   ;;  %s132_s0 = inlined_call_operand.vmem [shape: bf16[16,32], index: 0, kind: input, shape index: {}]   ;;  %s133_s1 = inlined_call_operand.vmem [shape: f32[1,32], index: 1, kind: input, shape index: {}]   ;;  %s134_s2 = inlined_call_operand.vmem [shape: f32[1,32], index: 2, kind: input, shape index: {}]   ;;  %s135_s3 = inlined_call_operand.vmem [shape: bf16[16,32], index: 3, kind: output, shape index: {}]  }
   0x1   :  { %v86_v0 = vld [vmem:[%s132_s0] sm:$0xff]  }
   0x2   :  { %v87_v1 = vunpack.c.l.bf16 %v86_v0  ;;  %v88_v2 = vunpack.c.h.bf16 %v86_v0  ;;  %v79_v22 = vld [vmem:[%s133_s1] ss:$0 sm:$0xff] }
   0x3   :  { %v80_v24 = vld [vmem:[%s134_s2] ss:$0 sm:$0xff] }
   0x4   :  { %v21_v3 = vsel %vm20_vm0, %v87_v1, 0.0  ;;  %v24_v4 = vsel %vm20_vm0, %v88_v2, 0.0 }
   0x5   :  { %22 = vadd.xlane.f32.xlu0 %v21_v3 }
   0x9   :  { %25 = vadd.xlane.f32.xlu0 %v24_v4 }
  0x92   :  { %v23_v5 = vpop.xlane.xlu0 %22 }
  0x93   :  { %v28_v6 = vmul.f32 0.03125, %v23_v5 }
  0x95   :  { %v30_v7 = vsub.f32 %v87_v1, %v28_v6 }
  0x96   :  { %v26_v8 = vpop.xlane.xlu0 %25 }
  0x97   :  { %v29_v9 = vmul.f32 0.03125, %v26_v8  ;;  %v32_v10 = vmul.f32 %v30_v7, %v30_v7 }
  0x99   :  { %v31_v11 = vsub.f32 %v88_v2, %v29_v9  ;;  %v34_v12 = vsel %vm20_vm0, %v32_v10, 0.0 }
  0x9a   :  { %35 = vadd.xlane.f32.xlu1 %v34_v12 }
  0x9b   :  { %v33_v13 = vmul.f32 %v31_v11, %v31_v11 }
  0x9d   :  { %v37_v14 = vsel %vm20_vm0, %v33_v13, 0.0 }
  0x9e   :  { %38 = vadd.xlane.f32.xlu1 %v37_v14 }
 0x127   :  { %v36_v15 = vpop.xlane.xlu1 %35 }
 0x128   :  { %v40_v16 = vmul.f32 0.03125, %v36_v15 }
 0x12a   :  { %v42_v17 = vadd.f32 1e-05, %v40_v16 }
 0x12b   :  { %v39_v18 = vpop.xlane.xlu1 %38 }
 0x12c   :  { %89 = vrsqrt.f32 %v42_v17  ;;  %v41_v19 = vmul.f32 0.03125, %v39_v18 }
 0x12e   :  { %v43_v20 = vadd.f32 1e-05, %v41_v19 }
 0x130   :  { %91 = vrsqrt.f32 %v43_v20 }
 0x136   :  { %v90_v21 = vpop.eup %89 }
 0x137   :  { %v46_v23 = vmul.f32 %v90_v21, %v30_v7 }
 0x139   :  { %v54_v25 = vmul.f32 %v79_v22, %v46_v23 }
 0x13a   :  { %v92_v26 = vpop.eup %91 }
 0x13b   :  { %v62_v27 = vadd.f32 %v80_v24, %v54_v25  ;;  %v47_v28 = vmul.f32 %v92_v26, %v31_v11 }
 0x13d   :  { %v83_v29 = vpack.c.bf16 %v62_v27, %v62_v27  ;;  %v55_v30 = vmul.f32 %v79_v22, %v47_v28 }
 0x13f   :  { %73 = vst.msk [vmem:[%s135_s3] sm:$0xf] %vm72_vm1, %v83_v29  ;;  %v63_v31 = vadd.f32 %v80_v24, %v55_v30 }
 0x141   :  { %v84_v32 = vpack.c.bf16 %v63_v31, %v63_v31 }
 0x143   :  { %74 = vst.msk [vmem:[%s135_s3 + $0x4] sm:$0xf] %vm72_vm1, %v84_v32 }

// kernel: roberta_regression_forward.12
= control target key start
LH: loop header
LB: loop body
LE: loop exit
PB: predicated region body
PF: predicated region fallthrough
CT: control target
= control target key end

     0   :  { %vm19_vm0 = vcmask 785408   ;;  %v151_v0 = vmov 0.0   ;;  %vm152_vm1 = vmmov 0   ;;  %vm47_vm2 = vcmask 261120   ;;  %s195_s1 = inlined_call_operand.vmem [shape: bf16[32,96], index: 1, kind: input, shape index: {}]   ;;  %s196_s0 = inlined_call_operand.vmem [shape: bf16[16,32], index: 0, kind: input, shape index: {}]   ;;  %s197_s2 = inlined_call_operand.vmem [shape: f32[1,96], index: 2, kind: input, shape index: {}]   ;;  %s198_s3 = inlined_call_operand.vmem [shape: bf16[16,96], index: 3, kind: output, shape index: {}]  }
   0x1   :  { %138 = vmatprep.subr.bf16.mxu0 %v151_v0  ;;  %v148_v1 = vld [vmem:[%s195_s1] sm:$0xff]   ;;  %142 = vmatprep.mubr.msk.bf16.mxu0 %vm152_vm1, %v151_v0  ;;  %20 = vst.msk [vmem:[#allocation2] sm:$0xff] %vm19_vm0, %v151_v0  ;;  %21 = vst.msk [vmem:[#allocation2 + $0x8] sm:$0xff] %vm19_vm0, %v151_v0  ;;  %v149_v2 = vld [vmem:[%s195_s1 + $0x8] sm:$0xff]   ;;  %vm119_vm3 = vcmask 781312  }
   0x2   :  { %139 = vmatpush3.bf16.msra.mxu0 %v148_v1  ;;  %v150_v3 = vld [vmem:[%s196_s0] sm:$0xff]  }
   0x3   :  { %140 = vmatprep.subr.bf16.mxu0 %v151_v0  ;;  %v130_v12 = vld [vmem:[%s197_s2] ss:$0 sm:$0xff] }
   0x6   :  { %141 = vmatpush3.bf16.msra.mxu0 %v149_v2 }
   0x8   :  { %v22_v4 = vld [vmem:[#allocation2] sm:$0xff]  ;;  %v23_v6 = vld [vmem:[#allocation2 + $0x8] sm:$0xff] }
   0x9   :  { %143 = vmatmul.mubr.msk.bf16.vlgmr.msra.gmra.mrb[0].mxu0 %vm47_vm2, %v150_v3 }
  0xdc   :  { %v85_v5 = vpop.f32.mrb[0].mxu0 }
  0xdd   :  { %v92_v7 = vadd.f32 %v85_v5, %v22_v4  ;;  %v144_v8 = vpop.f32.mrb[1].mxu0 }
  0xde   :  { %v88_v9 = vpop.f32.mrb[2].mxu0 }
  0xdf   :  { %95 = vst.msk [vmem:[#allocation2] sm:$0xff] %vm19_vm0, %v92_v7  ;;  %v93_v10 = vadd.f32 %v88_v9, %v23_v6  ;;  %v145_v11 = vpop.f32.mrb[3].mxu0 }
  0xe1   :  { %96 = vst.msk [vmem:[#allocation2 + $0x8] sm:$0xff] %vm19_vm0, %v93_v10 }
  0xe6   :  { %v100_v13 = vld [vmem:[#allocation2] sm:$0xff] }
  0xe7   :  { %v109_v14 = vadd.f32 %v130_v12, %v100_v13 }
  0xe8   :  { %v101_v15 = vld [vmem:[#allocation2 + $0x8] sm:$0xff] }
  0xe9   :  { %v133_v16 = vpack.c.bf16 %v109_v14, %v109_v14  ;;  %v110_v17 = vadd.f32 %v130_v12, %v101_v15 }
  0xeb   :  { %120 = vst.msk [vmem:[%s198_s3] sm:$0xf] %vm119_vm3, %v133_v16  ;;  %v134_v18 = vpack.c.bf16 %v110_v17, %v110_v17 }
  0xed   :  { %121 = vst.msk [vmem:[%s198_s3 + $0x4] sm:$0xf] %vm119_vm3, %v134_v18 }

// kernel: roberta_regression_forward.14
= control target key start
LH: loop header
LB: loop body
LE: loop exit
PB: predicated region body
PF: predicated region fallthrough
CT: control target
= control target key end

     0   :  { %vm28_vm0 = vcmask 261120   ;;  %v220_v0 = vmov 0.0   ;;  %vm221_vm1 = vmmov 0   ;;  %vm178_vm2 = vcmask 257024   ;;  %s293_s1 = inlined_call_operand.vmem [shape: bf16[32,32], index: 1, kind: input, shape index: {}]   ;;  %s294_s0 = inlined_call_operand.vmem [shape: bf16[16,32], index: 0, kind: input, shape index: {}]   ;;  %s295_s3 = inlined_call_operand.vmem [shape: bf16[16,32], index: 3, kind: input, shape index: {}]   ;;  %s296_s2 = inlined_call_operand.vmem [shape: f32[1,32], index: 2, kind: input, shape index: {}]   ;;  %s297_s4 = inlined_call_operand.vmem [shape: f32[1,32], index: 4, kind: input, shape index: {}]   ;;  %s298_s5 = inlined_call_operand.vmem [shape: f32[1,32], index: 5, kind: input, shape index: {}]   ;;  %s299_s6 = inlined_call_operand.vmem [shape: bf16[16,32], index: 6, kind: output, shape index: {}]  }
   0x1   :  { %203 = vmatprep.subr.bf16.mxu0 %v220_v0  ;;  %v213_v1 = vld [vmem:[%s293_s1] sm:$0xff]   ;;  %207 = vmatprep.mubr.msk.bf16.mxu0 %vm221_vm1, %v220_v0  ;;  %29 = vst.msk [vmem:[#allocation2] sm:$0xff] %vm28_vm0, %v220_v0  ;;  %30 = vst.msk [vmem:[#allocation2 + $0x8] sm:$0xff] %vm28_vm0, %v220_v0  ;;  %v214_v2 = vld [vmem:[%s293_s1 + $0x8] sm:$0xff]  }
   0x2   :  { %204 = vmatpush3.bf16.msra.mxu0 %v213_v1  ;;  %v215_v3 = vld [vmem:[%s294_s0] sm:$0xff]  }
   0x3   :  { %205 = vmatprep.subr.bf16.mxu0 %v220_v0  ;;  %v197_v12 = vld [vmem:[%s295_s3] sm:$0xff]  }
   0x4   :  { %v189_v13 = vld [vmem:[%s296_s2] ss:$0 sm:$0xff]  ;;  %v198_v14 = vunpack.c.l.bf16 %v197_v12  ;;  %v199_v17 = vunpack.c.h.bf16 %v197_v12 }
   0x5   :  { %v190_v41 = vld [vmem:[%s297_s4] ss:$0 sm:$0xff] }
   0x6   :  { %206 = vmatpush3.bf16.msra.mxu0 %v214_v2  ;;  %v191_v43 = vld [vmem:[%s298_s5] ss:$0 sm:$0xff] }
   0x8   :  { %v31_v4 = vld [vmem:[#allocation2] sm:$0xff]  ;;  %v32_v6 = vld [vmem:[#allocation2 + $0x8] sm:$0xff] }
   0x9   :  { %208 = vmatmul.mubr.msk.bf16.vlgmr.msra.gmra.mrb[0].mxu0 %vm28_vm0, %v215_v3 }
  0xdc   :  { %v94_v5 = vpop.f32.mrb[0].mxu0 }
  0xdd   :  { %v101_v7 = vadd.f32 %v94_v5, %v31_v4  ;;  %v209_v8 = vpop.f32.mrb[1].mxu0 }
  0xde   :  { %v97_v9 = vpop.f32.mrb[2].mxu0 }
  0xdf   :  { %103 = vst.msk [vmem:[#allocation2] sm:$0xff] %vm28_vm0, %v101_v7  ;;  %v102_v10 = vadd.f32 %v97_v9, %v32_v6  ;;  %v210_v11 = vpop.f32.mrb[3].mxu0 }
  0xe1   :  { %104 = vst.msk [vmem:[#allocation2 + $0x8] sm:$0xff] %vm28_vm0, %v102_v10 }
  0xe6   :  { %v108_v15 = vld [vmem:[#allocation2] sm:$0xff] }
  0xe7   :  { %v117_v16 = vadd.f32 %v189_v13, %v108_v15 }
  0xe8   :  { %v109_v18 = vld [vmem:[#allocation2 + $0x8] sm:$0xff] }
  0xe9   :  { %v123_v19 = vadd.f32 %v198_v14, %v117_v16  ;;  %v118_v20 = vadd.f32 %v189_v13, %v109_v18 }
  0xeb   :  { %v127_v21 = vsel %vm28_vm0, %v123_v19, 0.0  ;;  %v124_v22 = vadd.f32 %v199_v17, %v118_v20 }
  0xec   :  { %128 = vadd.xlane.f32.xlu0 %v127_v21 }
  0xed   :  { %v130_v23 = vsel %vm28_vm0, %v124_v22, 0.0 }
  0xf0   :  { %131 = vadd.xlane.f32.xlu0 %v130_v23 }
 0x179   :  { %v129_v24 = vpop.xlane.xlu0 %128 }
 0x17a   :  { %v134_v25 = vmul.f32 0.03125, %v129_v24 }
 0x17c   :  { %v136_v26 = vsub.f32 %v123_v19, %v134_v25 }
 0x17d   :  { %v132_v27 = vpop.xlane.xlu0 %131 }
 0x17e   :  { %v135_v28 = vmul.f32 0.03125, %v132_v27  ;;  %v138_v29 = vmul.f32 %v136_v26, %v136_v26 }
 0x180   :  { %v137_v30 = vsub.f32 %v124_v22, %v135_v28  ;;  %v140_v31 = vsel %vm28_vm0, %v138_v29, 0.0 }
 0x181   :  { %141 = vadd.xlane.f32.xlu1 %v140_v31 }
 0x182   :  { %v139_v32 = vmul.f32 %v137_v30, %v137_v30 }
 0x184   :  { %v143_v33 = vsel %vm28_vm0, %v139_v32, 0.0 }
 0x185   :  { %144 = vadd.xlane.f32.xlu1 %v143_v33 }
 0x20e   :  { %v142_v34 = vpop.xlane.xlu1 %141 }
 0x20f   :  { %v146_v35 = vmul.f32 0.03125, %v142_v34 }
 0x211   :  { %v148_v36 = vadd.f32 1e-05, %v146_v35 }
 0x212   :  { %v145_v37 = vpop.xlane.xlu1 %144 }
 0x213   :  { %216 = vrsqrt.f32 %v148_v36  ;;  %v147_v38 = vmul.f32 0.03125, %v145_v37 }
 0x215   :  { %v149_v39 = vadd.f32 1e-05, %v147_v38 }
 0x217   :  { %218 = vrsqrt.f32 %v149_v39 }
 0x21d   :  { %v217_v40 = vpop.eup %216 }
 0x21e   :  { %v152_v42 = vmul.f32 %v217_v40, %v136_v26 }
 0x220   :  { %v160_v44 = vmul.f32 %v190_v41, %v152_v42 }
 0x221   :  { %v219_v45 = vpop.eup %218 }
 0x222   :  { %v168_v46 = vadd.f32 %v191_v43, %v160_v44  ;;  %v153_v47 = vmul.f32 %v219_v45, %v137_v30 }
 0x224   :  { %v194_v48 = vpack.c.bf16 %v168_v46, %v168_v46  ;;  %v161_v49 = vmul.f32 %v190_v41, %v153_v47 }
 0x226   :  { %179 = vst.msk [vmem:[%s299_s6] sm:$0xf] %vm178_vm2, %v194_v48  ;;  %v169_v50 = vadd.f32 %v191_v43, %v161_v49 }
 0x228   :  { %v195_v51 = vpack.c.bf16 %v169_v50, %v169_v50 }
 0x22a   :  { %180 = vst.msk [vmem:[%s299_s6 + $0x4] sm:$0xf] %vm178_vm2, %v195_v51 }

// kernel: roberta_regression_forward.15
= control target key start
LH: loop header
LB: loop body
LE: loop exit
PB: predicated region body
PF: predicated region fallthrough
CT: control target
= control target key end

     0   :  { %vm19_vm0 = vcmask 523264   ;;  %v165_v0 = vmov 0.0   ;;  %vm166_vm1 = vmmov 0   ;;  %vm47_vm2 = vcmask 261120   ;;  %s209_s1 = inlined_call_operand.vmem [shape: bf16[32,64], index: 1, kind: input, shape index: {}]   ;;  %s210_s0 = inlined_call_operand.vmem [shape: bf16[16,32], index: 0, kind: input, shape index: {}]   ;;  %s211_s2 = inlined_call_operand.vmem [shape: f32[1,64], index: 2, kind: input, shape index: {}]   ;;  %s212_s3 = inlined_call_operand.vmem [shape: bf16[16,64], index: 3, kind: output, shape index: {}]  }
   0x1   :  { %148 = vmatprep.subr.bf16.mxu0 %v165_v0  ;;  %v158_v1 = vld [vmem:[%s209_s1] sm:$0xff]   ;;  %152 = vmatprep.mubr.msk.bf16.mxu0 %vm166_vm1, %v165_v0  ;;  %20 = vst.msk [vmem:[#allocation2] sm:$0xff] %vm19_vm0, %v165_v0  ;;  %21 = vst.msk [vmem:[#allocation2 + $0x8] sm:$0xff] %vm19_vm0, %v165_v0  ;;  %v159_v2 = vld [vmem:[%s209_s1 + $0x8] sm:$0xff]   ;;  %vm129_vm3 = vcmask 519168  }
   0x2   :  { %149 = vmatpush3.bf16.msra.mxu0 %v158_v1  ;;  %v160_v3 = vld [vmem:[%s210_s0] sm:$0xff]  }
   0x3   :  { %150 = vmatprep.subr.bf16.mxu0 %v165_v0  ;;  %v140_v12 = vld [vmem:[%s211_s2] ss:$0 sm:$0xff] }
   0x6   :  { %151 = vmatpush3.bf16.msra.mxu0 %v159_v2 }
   0x8   :  { %v22_v4 = vld [vmem:[#allocation2] sm:$0xff]  ;;  %v23_v6 = vld [vmem:[#allocation2 + $0x8] sm:$0xff] }
   0x9   :  { %153 = vmatmul.mubr.msk.bf16.vlgmr.msra.gmra.mrb[0].mxu0 %vm47_vm2, %v160_v3 }
  0xdc   :  { %v85_v5 = vpop.f32.mrb[0].mxu0 }
  0xdd   :  { %v92_v7 = vadd.f32 %v85_v5, %v22_v4  ;;  %v154_v8 = vpop.f32.mrb[1].mxu0 }
  0xde   :  { %v88_v9 = vpop.f32.mrb[2].mxu0 }
  0xdf   :  { %95 = vst.msk [vmem:[#allocation2] sm:$0xff] %vm19_vm0, %v92_v7  ;;  %v93_v10 = vadd.f32 %v88_v9, %v23_v6  ;;  %v155_v11 = vpop.f32.mrb[3].mxu0 }
  0xe1   :  { %96 = vst.msk [vmem:[#allocation2 + $0x8] sm:$0xff] %vm19_vm0, %v93_v10 }
  0xe6   :  { %v100_v13 = vld [vmem:[#allocation2] sm:$0xff] }
  0xe7   :  { %v109_v14 = vadd.f32 %v140_v12, %v100_v13 }
  0xe8   :  { %v101_v15 = vld [vmem:[#allocation2 + $0x8] sm:$0xff] }
  0xe9   :  { %v113_v16 = vmul.f32 0.70710677, %v109_v14  ;;  %v110_v17 = vadd.f32 %v140_v12, %v101_v15  ;;  %v111_v20 = vmul.f32 0.5, %v109_v14 }
  0xeb   :  { %161 = verf.f32 %v113_v16  ;;  %v114_v18 = vmul.f32 0.70710677, %v110_v17  ;;  %v112_v24 = vmul.f32 0.5, %v110_v17 }
  0xed   :  { %163 = verf.f32 %v114_v18 }
  0xf5   :  { %v162_v19 = vpop.eup %161 }
  0xf6   :  { %v117_v21 = vadd.f32 1.0, %v162_v19 }
  0xf7   :  { %v164_v22 = vpop.eup %163 }
  0xf8   :  { %v119_v23 = vmul.f32 %v117_v21, %v111_v20  ;;  %v118_v25 = vadd.f32 1.0, %v164_v22 }
  0xfa   :  { %v143_v26 = vpack.c.bf16 %v119_v23, %v119_v23  ;;  %v120_v27 = vmul.f32 %v118_v25, %v112_v24 }
  0xfc   :  { %130 = vst.msk [vmem:[%s212_s3] sm:$0xf] %vm129_vm3, %v143_v26  ;;  %v144_v28 = vpack.c.bf16 %v120_v27, %v120_v27 }
  0xfe   :  { %131 = vst.msk [vmem:[%s212_s3 + $0x4] sm:$0xf] %vm129_vm3, %v144_v28 }

// kernel: roberta_regression_forward.16
= control target key start
LH: loop header
LB: loop body
LE: loop exit
PB: predicated region body
PF: predicated region fallthrough
CT: control target
= control target key end

     0   :  { %vm28_vm0 = vcmask 261120   ;;  %v247_v0 = vmov 0.0   ;;  %vm248_vm1 = vmmov 0   ;;  %vm72_vm2 = vcmask 523264   ;;  %s325_s1 = inlined_call_operand.vmem [shape: bf16[64,32], index: 1, kind: input, shape index: {}]   ;;  %s326_s0 = inlined_call_operand.vmem [shape: bf16[16,64], index: 0, kind: input, shape index: {}]   ;;  %s327_s3 = inlined_call_operand.vmem [shape: bf16[16,32], index: 3, kind: input, shape index: {}]   ;;  %s328_s2 = inlined_call_operand.vmem [shape: f32[1,32], index: 2, kind: input, shape index: {}]   ;;  %s329_s4 = inlined_call_operand.vmem [shape: f32[1,32], index: 4, kind: input, shape index: {}]   ;;  %s330_s5 = inlined_call_operand.vmem [shape: f32[1,32], index: 5, kind: input, shape index: {}]   ;;  %s331_s6 = inlined_call_operand.vmem [shape: bf16[16,32], index: 6, kind: output, shape index: {}]  }
   0x1   :  { %224 = vmatprep.subr.bf16.mxu0 %v247_v0  ;;  %v238_v1 = vld [vmem:[%s325_s1] sm:$0xff]   ;;  %232 = vmatprep.mubr.msk.bf16.mxu0 %vm248_vm1, %v247_v0  ;;  %29 = vst.msk [vmem:[#allocation2] sm:$0xff] %vm28_vm0, %v247_v0  ;;  %30 = vst.msk [vmem:[#allocation2 + $0x8] sm:$0xff] %vm28_vm0, %v247_v0  ;;  %v239_v2 = vld [vmem:[%s325_s1 + $0x8] sm:$0xff]   ;;  %vm195_vm3 = vcmask 257024  }
   0x2   :  { %225 = vmatpush3.bf16.msra.mxu0 %v238_v1  ;;  %v240_v3 = vld [vmem:[%s325_s1 + $0x10] sm:$0xff]   ;;  %v241_v4 = vld [vmem:[%s325_s1 + $0x18] sm:$0xff]   ;;  %v242_v5 = vld [vmem:[%s326_s0] sm:$0xff]  }
   0x3   :  { %226 = vmatprep.subr.bf16.mxu0 %v247_v0  ;;  %v216_v14 = vld [vmem:[%s327_s3] sm:$0xff]  }
   0x4   :  { %v208_v15 = vld [vmem:[%s328_s2] ss:$0 sm:$0xff]  ;;  %v217_v16 = vunpack.c.l.bf16 %v216_v14  ;;  %v218_v19 = vunpack.c.h.bf16 %v216_v14 }
   0x5   :  { %v209_v43 = vld [vmem:[%s329_s4] ss:$0 sm:$0xff] }
   0x6   :  { %227 = vmatpush3.bf16.msra.mxu0 %v239_v2  ;;  %v210_v45 = vld [vmem:[%s330_s5] ss:$0 sm:$0xff] }
   0x7   :  { %228 = vmatprep.subr.bf16.mxu0 %v247_v0 }
   0x8   :  { %v31_v6 = vld [vmem:[#allocation2] sm:$0xff]  ;;  %v32_v8 = vld [vmem:[#allocation2 + $0x8] sm:$0xff] }
   0xa   :  { %229 = vmatpush3.bf16.msra.mxu0 %v240_v3 }
   0xb   :  { %230 = vmatprep.subr.bf16.mxu0 %v247_v0 }
   0xe   :  { %231 = vmatpush3.bf16.msra.mxu0 %v241_v4 }
  0x11   :  { %233 = vmatmul.mubr.msk.bf16.vlgmr.msra.gmra.mrb[0].mxu0 %vm72_vm2, %v242_v5 }
  0xe4   :  { %v110_v7 = vpop.f32.mrb[0].mxu0 }
  0xe5   :  { %v117_v9 = vadd.f32 %v110_v7, %v31_v6  ;;  %v234_v10 = vpop.f32.mrb[1].mxu0 }
  0xe6   :  { %v113_v11 = vpop.f32.mrb[2].mxu0 }
  0xe7   :  { %120 = vst.msk [vmem:[#allocation2] sm:$0xff] %vm28_vm0, %v117_v9  ;;  %v118_v12 = vadd.f32 %v113_v11, %v32_v8  ;;  %v235_v13 = vpop.f32.mrb[3].mxu0 }
  0xe9   :  { %121 = vst.msk [vmem:[#allocation2 + $0x8] sm:$0xff] %vm28_vm0, %v118_v12 }
  0xee   :  { %v125_v17 = vld [vmem:[#allocation2] sm:$0xff] }
  0xef   :  { %v134_v18 = vadd.f32 %v208_v15, %v125_v17 }
  0xf0   :  { %v126_v20 = vld [vmem:[#allocation2 + $0x8] sm:$0xff] }
  0xf1   :  { %v140_v21 = vadd.f32 %v217_v16, %v134_v18  ;;  %v135_v22 = vadd.f32 %v208_v15, %v126_v20 }
  0xf3   :  { %v144_v23 = vsel %vm28_vm0, %v140_v21, 0.0  ;;  %v141_v24 = vadd.f32 %v218_v19, %v135_v22 }
  0xf4   :  { %145 = vadd.xlane.f32.xlu0 %v144_v23 }
  0xf5   :  { %v147_v25 = vsel %vm28_vm0, %v141_v24, 0.0 }
  0xf8   :  { %148 = vadd.xlane.f32.xlu0 %v147_v25 }
 0x181   :  { %v146_v26 = vpop.xlane.xlu0 %145 }
 0x182   :  { %v151_v27 = vmul.f32 0.03125, %v146_v26 }
 0x184   :  { %v153_v28 = vsub.f32 %v140_v21, %v151_v27 }
 0x185   :  { %v149_v29 = vpop.xlane.xlu0 %148 }
 0x186   :  { %v152_v30 = vmul.f32 0.03125, %v149_v29  ;;  %v155_v31 = vmul.f32 %v153_v28, %v153_v28 }
 0x188   :  { %v154_v32 = vsub.f32 %v141_v24, %v152_v30  ;;  %v157_v33 = vsel %vm28_vm0, %v155_v31, 0.0 }
 0x189   :  { %158 = vadd.xlane.f32.xlu1 %v157_v33 }
 0x18a   :  { %v156_v34 = vmul.f32 %v154_v32, %v154_v32 }
 0x18c   :  { %v160_v35 = vsel %vm28_vm0, %v156_v34, 0.0 }
 0x18d   :  { %161 = vadd.xlane.f32.xlu1 %v160_v35 }
 0x216   :  { %v159_v36 = vpop.xlane.xlu1 %158 }
 0x217   :  { %v163_v37 = vmul.f32 0.03125, %v159_v36 }
 0x219   :  { %v165_v38 = vadd.f32 1e-05, %v163_v37 }
 0x21a   :  { %v162_v39 = vpop.xlane.xlu1 %161 }
 0x21b   :  { %243 = vrsqrt.f32 %v165_v38  ;;  %v164_v40 = vmul.f32 0.03125, %v162_v39 }
 0x21d   :  { %v166_v41 = vadd.f32 1e-05, %v164_v40 }
 0x21f   :  { %245 = vrsqrt.f32 %v166_v41 }
 0x225   :  { %v244_v42 = vpop.eup %243 }
 0x226   :  { %v169_v44 = vmul.f32 %v244_v42, %v153_v28 }
 0x228   :  { %v177_v46 = vmul.f32 %v209_v43, %v169_v44 }
 0x229   :  { %v246_v47 = vpop.eup %245 }
 0x22a   :  { %v185_v48 = vadd.f32 %v210_v45, %v177_v46  ;;  %v170_v49 = vmul.f32 %v246_v47, %v154_v32 }
 0x22c   :  { %v213_v50 = vpack.c.bf16 %v185_v48, %v185_v48  ;;  %v178_v51 = vmul.f32 %v209_v43, %v170_v49 }
 0x22e   :  { %196 = vst.msk [vmem:[%s331_s6] sm:$0xf] %vm195_vm3, %v213_v50  ;;  %v186_v52 = vadd.f32 %v210_v45, %v178_v51 }
 0x230   :  { %v214_v53 = vpack.c.bf16 %v186_v52, %v186_v52 }
 0x232   :  { %197 = vst.msk [vmem:[%s331_s6 + $0x4] sm:$0xf] %vm195_vm3, %v214_v53 }

// kernel: roberta_regression_forward.21
= control target key start
LH: loop header
LB: loop body
LE: loop exit
PB: predicated region body
PF: predicated region fallthrough
CT: control target
= control target key end

     0   :  { %vm36_vm0 = vcmask 261120   ;;  %v269_v0 = vmov 0.0   ;;  %vm270_vm1 = vmmov 0   ;;  %vm80_vm2 = vcmask 523264   ;;  %s365_s1 = inlined_call_operand.vmem [shape: bf16[64,32], index: 1, kind: input, shape index: {}]   ;;  %s366_s0 = inlined_call_operand.vmem [shape: bf16[16,64], index: 0, kind: input, shape index: {}]   ;;  %s367_s3 = inlined_call_operand.vmem [shape: bf16[16,32], index: 3, kind: input, shape index: {}]   ;;  %s368_s2 = inlined_call_operand.vmem [shape: f32[1,32], index: 2, kind: input, shape index: {}]   ;;  %s369_s7 = inlined_call_operand.<no memory space> [shape: f32[1,1], index: 7, kind: input, shape index: {}]   ;;  %s370_s4 = inlined_call_operand.vmem [shape: f32[1,32], index: 4, kind: input, shape index: {}]   ;;  %s371_s5 = inlined_call_operand.vmem [shape: f32[1,32], index: 5, kind: input, shape index: {}]   ;;  %s372_s6 = inlined_call_operand.vmem [shape: f32[1,32], index: 6, kind: input, shape index: {}]   ;;  %s373_s8 = inlined_call_operand.vmem [shape: f32[16,1], index: 8, kind: output, shape index: {}]  }
   0x1   :  { %246 = vmatprep.subr.bf16.mxu0 %v269_v0  ;;  %v260_v1 = vld [vmem:[%s365_s1] sm:$0xff]   ;;  %254 = vmatprep.mubr.msk.bf16.mxu0 %vm270_vm1, %v269_v0  ;;  %37 = vst.msk [vmem:[#allocation2] sm:$0xff] %vm36_vm0, %v269_v0  ;;  %38 = vst.msk [vmem:[#allocation2 + $0x8] sm:$0xff] %vm36_vm0, %v269_v0  ;;  %v261_v2 = vld [vmem:[%s365_s1 + $0x8] sm:$0xff]   ;;  %v13_v36 = vstv %s369_s7  ;;  %vm219_vm3 = vcmask 7168  }
   0x2   :  { %247 = vmatpush3.bf16.msra.mxu0 %v260_v1  ;;  %v262_v3 = vld [vmem:[%s365_s1 + $0x10] sm:$0xff]   ;;  %v263_v4 = vld [vmem:[%s365_s1 + $0x18] sm:$0xff]   ;;  %v264_v5 = vld [vmem:[%s366_s0] sm:$0xff]   ;;  %14 = vst [vmem:[#allocation3] sm:$0x1] %v13_v36 }
   0x3   :  { %248 = vmatprep.subr.bf16.mxu0 %v269_v0  ;;  %v238_v14 = vld [vmem:[%s367_s3] sm:$0xff]  }
   0x4   :  { %v232_v15 = vld [vmem:[%s368_s2] ss:$0 sm:$0xff]  ;;  %v239_v16 = vunpack.c.l.bf16 %v238_v14  ;;  %v240_v19 = vunpack.c.h.bf16 %v238_v14 }
   0x5   :  { %v233_v44 = vld [vmem:[%s370_s4] ss:$0 sm:$0xff] }
   0x6   :  { %249 = vmatpush3.bf16.msra.mxu0 %v261_v2  ;;  %v234_v46 = vld [vmem:[%s371_s5] ss:$0 sm:$0xff] }
   0x7   :  { %250 = vmatprep.subr.bf16.mxu0 %v269_v0  ;;  %v235_v49 = vld [vmem:[%s372_s6] ss:$0 sm:$0xff] }
   0x8   :  { %v39_v6 = vld [vmem:[#allocation2] sm:$0xff]  ;;  %v40_v8 = vld [vmem:[#allocation2 + $0x8] sm:$0xff] }
   0x9   :  { %v236_v58 = vld [vmem:[#allocation3] ss:$0 sm:$0xff] }
   0xa   :  { %251 = vmatpush3.bf16.msra.mxu0 %v262_v3 }
   0xb   :  { %252 = vmatprep.subr.bf16.mxu0 %v269_v0 }
   0xe   :  { %253 = vmatpush3.bf16.msra.mxu0 %v263_v4 }
  0x11   :  { %255 = vmatmul.mubr.msk.bf16.vlgmr.msra.gmra.mrb[0].mxu0 %vm80_vm2, %v264_v5 }
  0xe4   :  { %v118_v7 = vpop.f32.mrb[0].mxu0 }
  0xe5   :  { %v125_v9 = vadd.f32 %v118_v7, %v39_v6  ;;  %v256_v10 = vpop.f32.mrb[1].mxu0 }
  0xe6   :  { %v121_v11 = vpop.f32.mrb[2].mxu0 }
  0xe7   :  { %128 = vst.msk [vmem:[#allocation2] sm:$0xff] %vm36_vm0, %v125_v9  ;;  %v126_v12 = vadd.f32 %v121_v11, %v40_v8  ;;  %v257_v13 = vpop.f32.mrb[3].mxu0 }
  0xe9   :  { %129 = vst.msk [vmem:[#allocation2 + $0x8] sm:$0xff] %vm36_vm0, %v126_v12 }
  0xee   :  { %v133_v17 = vld [vmem:[#allocation2] sm:$0xff] }
  0xef   :  { %v142_v18 = vadd.f32 %v232_v15, %v133_v17 }
  0xf0   :  { %v134_v20 = vld [vmem:[#allocation2 + $0x8] sm:$0xff] }
  0xf1   :  { %v148_v21 = vadd.f32 %v239_v16, %v142_v18  ;;  %v143_v22 = vadd.f32 %v232_v15, %v134_v20 }
  0xf3   :  { %v152_v23 = vsel %vm36_vm0, %v148_v21, 0.0  ;;  %v149_v24 = vadd.f32 %v240_v19, %v143_v22 }
  0xf4   :  { %153 = vadd.xlane.f32.xlu0 %v152_v23 }
  0xf5   :  { %v155_v25 = vsel %vm36_vm0, %v149_v24, 0.0 }
  0xf8   :  { %156 = vadd.xlane.f32.xlu0 %v155_v25 }
 0x181   :  { %v154_v26 = vpop.xlane.xlu0 %153 }
 0x182   :  { %v159_v27 = vmul.f32 0.03125, %v154_v26 }
 0x184   :  { %v161_v28 = vsub.f32 %v148_v21, %v159_v27 }
 0x185   :  { %v157_v29 = vpop.xlane.xlu0 %156 }
 0x186   :  { %v160_v30 = vmul.f32 0.03125, %v157_v29  ;;  %v163_v31 = vmul.f32 %v161_v28, %v161_v28 }
 0x188   :  { %v162_v32 = vsub.f32 %v149_v24, %v160_v30  ;;  %v165_v33 = vsel %vm36_vm0, %v163_v31, 0.0 }
 0x189   :  { %166 = vadd.xlane.f32.xlu1 %v165_v33 }
 0x18a   :  { %v164_v34 = vmul.f32 %v162_v32, %v162_v32 }
 0x18c   :  { %v168_v35 = vsel %vm36_vm0, %v164_v34, 0.0 }
 0x18d   :  { %169 = vadd.xlane.f32.xlu1 %v168_v35 }
 0x216   :  { %v167_v37 = vpop.xlane.xlu1 %166 }
 0x217   :  { %v171_v38 = vmul.f32 0.03125, %v167_v37 }
 0x219   :  { %v173_v39 = vadd.f32 1e-05, %v171_v38 }
 0x21a   :  { %v170_v40 = vpop.xlane.xlu1 %169 }
 0x21b   :  { %265 = vrsqrt.f32 %v173_v39  ;;  %v172_v41 = vmul.f32 0.03125, %v170_v40 }
 0x21d   :  { %v174_v42 = vadd.f32 1e-05, %v172_v41 }
 0x21f   :  { %267 = vrsqrt.f32 %v174_v42 }
 0x225   :  { %v266_v43 = vpop.eup %265 }
 0x226   :  { %v177_v45 = vmul.f32 %v266_v43, %v161_v28 }
 0x228   :  { %v185_v47 = vmul.f32 %v233_v44, %v177_v45 }
 0x229   :  { %v268_v48 = vpop.eup %267 }
 0x22a   :  { %v193_v50 = vadd.f32 %v234_v46, %v185_v47  ;;  %v178_v51 = vmul.f32 %v268_v48, %v162_v32 }
 0x22c   :  { %v202_v52 = vmul.f32 %v235_v49, %v193_v50  ;;  %v186_v53 = vmul.f32 %v233_v44, %v178_v51 }
 0x22e   :  { %v204_v54 = vsel %vm36_vm0, %v202_v52, 0.0  ;;  %v194_v55 = vadd.f32 %v234_v46, %v186_v53 }
 0x22f   :  { %205 = vadd.xlane.f32.xlu0 %v204_v54 }
 0x230   :  { %v203_v56 = vmul.f32 %v235_v49, %v194_v55 }
 0x232   :  { %v207_v57 = vsel %vm36_vm0, %v203_v56, 0.0 }
 0x233   :  { %208 = vadd.xlane.f32.xlu1 %v207_v57 }
 0x2bc   :  { %v206_v59 = vpop.xlane.xlu0 %205 }
 0x2bd   :  { %v217_v60 = vadd.f32 %v236_v58, %v206_v59 }
 0x2bf   :  { %220 = vst.msk [vmem:[%s373_s8] sm:$0xff] %vm219_vm3, %v217_v60 }
 0x2c0   :  { %v209_v61 = vpop.xlane.xlu1 %208 }
 0x2c1   :  { %v218_v62 = vadd.f32 %v236_v58, %v209_v61 }
 0x2c3   :  { %221 = vst.msk [vmem:[%s373_s8 + $0x8] sm:$0xff] %vm219_vm3, %v218_v62 }

</bundles_post_ra>
